<compile_context>
chip_gen: v7x
topology: tpu7x:2x2x1
jax: 0.10.0
libtpu: 0.0.40
codegen_flags: <defaults>
</compile_context>

<pallas_src>
import functools
import math

import jax
import jax.numpy as jnp
from jax.experimental import pallas as pl
from jax.experimental.pallas import tpu as pltpu

_NEG_INF = -1e30  # finite mask value: avoids (-inf)-(-inf) NaNs in online softmax


def _silu(x):
    return x * (1.0 / (1.0 + jnp.exp(-x)))


# ---------------------------------------------------------------------------
# Kernel 1: RMSNorm + per-head QKV projection + RoPE    grid=(B, S-tiles, heads)
# ---------------------------------------------------------------------------
def _qkv_rope_kernel(x_ref, g_ref, wq_ref, wk_ref, wv_ref, cos_ref, sin_ref,
                     q_out, k_out, v_out, xn_sc, *, eps, half):
    h = pl.program_id(2)

    # Normalized activations are head-invariant: compute once per (b, s-tile).
    @pl.when(h == 0)
    def _():
        x = x_ref[0]                                         # (ts, H) f32
        var = jnp.mean(x * x, axis=-1, keepdims=True)
        xn = (x * jax.lax.rsqrt(var + eps)) * g_ref[...]
        xn_sc[...] = xn.astype(jnp.bfloat16)

    xn = xn_sc[...]                                          # (ts, H) bf16
    q = jnp.dot(xn, wq_ref[0], preferred_element_type=jnp.float32)   # (ts, hd)
    k = jnp.dot(xn, wk_ref[0], preferred_element_type=jnp.float32)
    v = jnp.dot(xn, wv_ref[0], preferred_element_type=jnp.float32)

    # Lane-dense rotate-half RoPE: cos/sin tables are full head_dim wide and
    # the sign is folded into the sin table -> no sub-lane slicing / concat.
    cos = cos_ref[...]
    sin = sin_ref[...]
    q_rot = q * cos + pltpu.roll(q, half, 1) * sin           # f32 math
    k_rot = k * cos + pltpu.roll(k, half, 1) * sin

    q_out[0, 0] = q_rot.astype(jnp.bfloat16)                 # 1/sqrt(hd) already in Wq
    k_out[0, 0] = k_rot.astype(jnp.bfloat16)
    v_out[0, 0] = v.astype(jnp.bfloat16)


# ---------------------------------------------------------------------------
# Kernel 2: flash attention + W_o projection + residual
#            grid=(B, q-tiles, heads, kv-tiles)
# ---------------------------------------------------------------------------
def _attn_kernel(q_ref, k_ref, v_ref, wo_ref, x_ref, o_ref,
                 m_sc, l_sc, ctx_sc, out_sc, *, block_q, block_kv):
    qi = pl.program_id(1)
    h = pl.program_id(2)
    ki = pl.program_id(3)
    nh = pl.num_programs(2)
    nk = pl.num_programs(3)

    @pl.when(jnp.logical_and(h == 0, ki == 0))
    def _():
        out_sc[...] = jnp.zeros_like(out_sc)

    @pl.when(ki == 0)
    def _():
        m_sc[...] = jnp.full_like(m_sc, _NEG_INF)
        l_sc[...] = jnp.zeros_like(l_sc)
        ctx_sc[...] = jnp.zeros_like(ctx_sc)

    # Causal tile skip: kv tiles strictly above the diagonal carry no data
    # (their DMA is also deduped by the index_map's min(ki, qi)).
    @pl.when(ki <= qi)
    def _():
        q = q_ref[0, 0]                                      # (tq, hd) bf16
        k = k_ref[0, 0]                                      # (tk, hd) bf16
        # Contract last dims of both operands -> no explicit K transpose.
        s = jax.lax.dot_general(q, k, (((1,), (1,)), ((), ())),
                                preferred_element_type=jnp.float32)   # (tq, tk)
        row = qi * block_q + jax.lax.broadcasted_iota(jnp.int32, s.shape, 0)
        col = ki * block_kv + jax.lax.broadcasted_iota(jnp.int32, s.shape, 1)
        s = jnp.where(col > row, _NEG_INF, s)

        m_prev = m_sc[...]
        m_new = jnp.maximum(m_prev, jnp.max(s, axis=-1, keepdims=True))
        alpha = jnp.exp(m_prev - m_new)
        p = jnp.exp(s - m_new)
        l_sc[...] = alpha * l_sc[...] + jnp.sum(p, axis=-1, keepdims=True)
        ctx_sc[...] = alpha * ctx_sc[...] + jnp.dot(
            p.astype(jnp.bfloat16), v_ref[0, 0],
            preferred_element_type=jnp.float32)
        m_sc[...] = m_new

    # Per (b, q-tile, head): finalize softmax and fold this head's row-block
    # of W_o into the (tq, H) output accumulator.
    @pl.when(ki == nk - 1)
    def _():
        ctx = ctx_sc[...] * pl.reciprocal(l_sc[...], approx=True)
        out_sc[...] += jnp.dot(ctx.astype(jnp.bfloat16), wo_ref[0],
                               preferred_element_type=jnp.float32)

    @pl.when(jnp.logical_and(h == nh - 1, ki == nk - 1))
    def _():
        o_ref[0] = x_ref[0] + out_sc[...]                    # residual add (f32)


# ---------------------------------------------------------------------------
# Kernel 3: RMSNorm + gated SiLU MLP + residual   grid=(B, S-tiles, inter-tiles)
# ---------------------------------------------------------------------------
def _mlp_kernel(x_ref, g_ref, wg_ref, wu_ref, wd_ref, o_ref,
                xn_sc, acc_sc, *, eps):
    j = pl.program_id(2)

    @pl.when(j == 0)
    def _():
        x = x_ref[0]                                         # (ts, H) f32
        var = jnp.mean(x * x, axis=-1, keepdims=True)
        xn = (x * jax.lax.rsqrt(var + eps)) * g_ref[...]
        xn_sc[...] = xn.astype(jnp.bfloat16)
        acc_sc[...] = jnp.zeros_like(acc_sc)

    xn = xn_sc[...]
    gate = jnp.dot(xn, wg_ref[...], preferred_element_type=jnp.float32)
    up = jnp.dot(xn, wu_ref[...], preferred_element_type=jnp.float32)
    act = _silu(gate) * up                                   # f32
    acc_sc[...] += jnp.dot(act.astype(jnp.bfloat16), wd_ref[...],
                           preferred_element_type=jnp.float32)

    @pl.when(j == pl.num_programs(2) - 1)
    def _():
        o_ref[0] = x_ref[0] + acc_sc[...]                    # residual add (f32)


# ---------------------------------------------------------------------------
# Wrapper
# ---------------------------------------------------------------------------
def llama_decoder_forward(hidden_states, attention_mask, params, *,
                          num_heads, eps=1e-5, rope_base=10000.0,
                          block_s=None, block_q=None, block_kv=None,
                          block_i=None):
    """Weights stored (in, out) so kernels compute x @ W (matches nn.Linear^T)."""
    B, S, H = hidden_states.shape
    assert H % num_heads == 0
    hd = H // num_heads
    assert hd % 2 == 0
    half = hd // 2
    # The torch module only consumes attention_mask.shape[-1] (causal mask).
    assert attention_mask.shape[-1] == S

    inter = params["wg"].shape[1]
    block_s = min(block_s or 256, S)
    block_q = min(block_q or 256, S)
    block_kv = min(block_kv or 256, S)
    block_i = min(block_i or 512, inter)
    assert S % block_s == 0 and S % block_q == 0 and S % block_kv == 0
    assert block_q == block_kv, "causal tile skip assumes square q/kv tiles"
    assert inter % block_i == 0

    f32, bf16 = jnp.float32, jnp.bfloat16
    x = hidden_states.astype(f32)

    # ---- weight layout / dtype prep (layout plumbing, done once) -----------
    scale = 1.0 / math.sqrt(hd)
    wq = (params["wq"].astype(f32) * scale).reshape(H, num_heads, hd)
    wq = jnp.transpose(wq, (1, 0, 2)).astype(bf16)            # (nh, H, hd), scaled
    wk = jnp.transpose(params["wk"].reshape(H, num_heads, hd), (1, 0, 2)).astype(bf16)
    wv = jnp.transpose(params["wv"].reshape(H, num_heads, hd), (1, 0, 2)).astype(bf16)
    wo = params["wo"].reshape(num_heads, hd, H).astype(bf16)   # (nh, hd, H)
    wg = params["wg"].astype(bf16)                             # (H, I)
    wu = params["wu"].astype(bf16)
    wd = params["wd"].astype(bf16)                             # (I, H)
    g_attn = params["g_attn"].astype(f32).reshape(1, H)
    g_mlp = params["g_mlp"].astype(f32).reshape(1, H)

    # ---- RoPE tables: (S, hd) wide, sign folded into sin (lane-dense) ------
    inv_freq = 1.0 / (rope_base ** (jnp.arange(0, hd, 2, dtype=f32) / hd))
    ang = jnp.arange(S, dtype=f32)[:, None] * inv_freq[None, :]      # (S, half)
    cos_t = jnp.concatenate([jnp.cos(ang), jnp.cos(ang)], axis=-1)   # (S, hd)
    sin_t = jnp.concatenate([-jnp.sin(ang), jnp.sin(ang)], axis=-1)  # (S, hd)

    def cparams(sem):
        return pltpu.CompilerParams(dimension_semantics=sem,
                                    vmem_limit_bytes=48 * 1024 * 1024)

    # ------------------- kernel 1: RMSNorm + QKV + RoPE ---------------------
    n_s = S // block_s
    qkv_shape = jax.ShapeDtypeStruct((B, num_heads, S, hd), bf16)
    q_r, k_r, v_r = pl.pallas_call(
        functools.partial(_qkv_rope_kernel, eps=eps, half=half),
        out_shape=(qkv_shape, qkv_shape, qkv_shape),
        grid=(B, n_s, num_heads),
        in_specs=[
            pl.BlockSpec((1, block_s, H), lambda b, si, h: (b, si, 0)),
            pl.BlockSpec((1, H), lambda b, si, h: (0, 0)),
            pl.BlockSpec((1, H, hd), lambda b, si, h: (h, 0, 0)),
            pl.BlockSpec((1, H, hd), lambda b, si, h: (h, 0, 0)),
            pl.BlockSpec((1, H, hd), lambda b, si, h: (h, 0, 0)),
            pl.BlockSpec((block_s, hd), lambda b, si, h: (si, 0)),
            pl.BlockSpec((block_s, hd), lambda b, si, h: (si, 0)),
        ],
        out_specs=(
            pl.BlockSpec((1, 1, block_s, hd), lambda b, si, h: (b, h, si, 0)),
            pl.BlockSpec((1, 1, block_s, hd), lambda b, si, h: (b, h, si, 0)),
            pl.BlockSpec((1, 1, block_s, hd), lambda b, si, h: (b, h, si, 0)),
        ),
        scratch_shapes=[pltpu.VMEM((block_s, H), bf16)],
        compiler_params=cparams(("parallel", "parallel", "arbitrary")),
    )(x, g_attn, wq, wk, wv, cos_t, sin_t)

    # ------- kernel 2: flash attention + W_o projection + residual ----------
    n_q = S // block_q
    n_kv = S // block_kv
    h1 = pl.pallas_call(
        functools.partial(_attn_kernel, block_q=block_q, block_kv=block_kv),
        out_shape=jax.ShapeDtypeStruct((B, S, H), f32),
        grid=(B, n_q, num_heads, n_kv),
        in_specs=[
            pl.BlockSpec((1, 1, block_q, hd), lambda b, qi, h, ki: (b, h, qi, 0)),
            pl.BlockSpec((1, 1, block_kv, hd),
                         lambda b, qi, h, ki: (b, h, jnp.minimum(ki, qi), 0)),
            pl.BlockSpec((1, 1, block_kv, hd),
                         lambda b, qi, h, ki: (b, h, jnp.minimum(ki, qi), 0)),
            pl.BlockSpec((1, hd, H), lambda b, qi, h, ki: (h, 0, 0)),
            pl.BlockSpec((1, block_q, H), lambda b, qi, h, ki: (b, qi, 0)),
        ],
        out_specs=pl.BlockSpec((1, block_q, H), lambda b, qi, h, ki: (b, qi, 0)),
        scratch_shapes=[
            pltpu.VMEM((block_q, 1), f32),    # running max m
            pltpu.VMEM((block_q, 1), f32),    # running sum l
            pltpu.VMEM((block_q, hd), f32),   # per-head context accumulator
            pltpu.VMEM((block_q, H), f32),    # all-heads output accumulator
        ],
        compiler_params=cparams(("parallel", "parallel", "arbitrary", "arbitrary")),
    )(q_r, k_r, v_r, wo, x)

    # ------------- kernel 3: RMSNorm + gated MLP + residual -----------------
    n_i = inter // block_i
    out = pl.pallas_call(
        functools.partial(_mlp_kernel, eps=eps),
        out_shape=jax.ShapeDtypeStruct((B, S, H), f32),
        grid=(B, n_s, n_i),
        in_specs=[
            pl.BlockSpec((1, block_s, H), lambda b, si, j: (b, si, 0)),
            pl.BlockSpec((1, H), lambda b, si, j: (0, 0)),
            pl.BlockSpec((H, block_i), lambda b, si, j: (0, j)),
            pl.BlockSpec((H, block_i), lambda b, si, j: (0, j)),
            pl.BlockSpec((block_i, H), lambda b, si, j: (j, 0)),
        ],
        out_specs=pl.BlockSpec((1, block_s, H), lambda b, si, j: (b, si, 0)),
        scratch_shapes=[pltpu.VMEM((block_s, H), bf16),
                        pltpu.VMEM((block_s, H), f32)],
        compiler_params=cparams(("parallel", "parallel", "arbitrary")),
    )(h1, g_mlp, wg, wu, wd)

    return (out,)


# ---------------------------------------------------------------------------
# Pure-JAX f32 reference (mirrors the PyTorch module)
# ---------------------------------------------------------------------------
def _reference(x, params, *, num_heads, eps=1e-5, rope_base=10000.0):
    B, S, H = x.shape
    hd = H // num_heads
    half = hd // 2

    def rms(h, g):
        var = jnp.mean(h * h, axis=-1, keepdims=True)
        return g * (h * jax.lax.rsqrt(var + eps))

    h = rms(x, params["g_attn"])
    q = (h @ params["wq"]).reshape(B, S, num_heads, hd)
    k = (h @ params["wk"]).reshape(B, S, num_heads, hd)
    v = (h @ params["wv"]).reshape(B, S, num_heads, hd)
    inv_freq = 1.0 / (rope_base ** (jnp.arange(0, hd, 2, dtype=jnp.float32) / hd))
    ang = jnp.arange(S, dtype=jnp.float32)[:, None] * inv_freq[None, :]
    cos = jnp.concatenate([jnp.cos(ang)] * 2, -1)[None, :, None, :]
    sin = jnp.concatenate([jnp.sin(ang)] * 2, -1)[None, :, None, :]
    rot = lambda t: jnp.concatenate([-t[..., half:], t[..., :half]], -1)
    q = q * cos + rot(q) * sin
    k = k * cos + rot(k) * sin
    s = jnp.einsum("bqhd,bkhd->bhqk", q, k) / jnp.sqrt(jnp.float32(hd))
    causal = jnp.where(jnp.arange(S)[None, :] > jnp.arange(S)[:, None], -jnp.inf, 0.0)
    p = jax.nn.softmax(s + causal, axis=-1)
    ctx = jnp.einsum("bhqk,bkhd->bqhd", p, v).reshape(B, S, H)
    h1 = x + ctx @ params["wo"]
    h2 = rms(h1, params["g_mlp"])
    return h1 + (_silu(h2 @ params["wg"]) * (h2 @ params["wu"])) @ params["wd"]


if __name__ == "__main__":
    key = jax.random.PRNGKey(0)
    batch, seq, hidden, inter, n_heads = 2, 128, 256, 512, 2

    ks = jax.random.split(key, 10)
    x = jax.random.normal(ks[0], (batch, seq, hidden), dtype=jnp.float32)
    attention_mask = jnp.ones((batch, seq), dtype=jnp.float32)

    def w(k, shape):
        return jax.random.normal(k, shape, dtype=jnp.float32) / math.sqrt(shape[0])

    params = {
        "g_attn": jnp.ones((hidden,), jnp.float32),
        "g_mlp": jnp.ones((hidden,), jnp.float32),
        "wq": w(ks[1], (hidden, hidden)),
        "wk": w(ks[2], (hidden, hidden)),
        "wv": w(ks[3], (hidden, hidden)),
        "wo": w(ks[4], (hidden, hidden)),
        "wg": w(ks[5], (hidden, inter)),
        "wu": w(ks[6], (hidden, inter)),
        "wd": w(ks[7], (inter, hidden)),
    }

    (out,) = llama_decoder_forward(
        x, attention_mask, params, num_heads=n_heads,
        block_s=64, block_q=64, block_kv=64, block_i=256)
    out = jax.block_until_ready(out)

    ref = _reference(x, params, num_heads=n_heads)
    assert out.shape == (batch, seq, hidden)
    # bf16 MXU inputs vs a pure-f32 reference -> relaxed tolerance.
    max_err = float(jnp.max(jnp.abs(out - ref)))
    ref_scale = float(jnp.max(jnp.abs(ref)))
    assert max_err <= 5e-2 * max(ref_scale, 1.0), (max_err, ref_scale)

    print("KERNEL_OK")
</pallas_src>

<mosaic_0001>
module attributes {stable_mosaic.version = 11 : i64} {
  func.func @_qkv_rope_kernel(%arg0: i32, %arg1: i32, %arg2: i32, %arg3: memref<1x64x256xf32, #tpu.memory_space<vmem>>, %arg4: memref<1x256xf32, #tpu.memory_space<vmem>>, %arg5: memref<1x256x128xbf16, #tpu.memory_space<vmem>>, %arg6: memref<1x256x128xbf16, #tpu.memory_space<vmem>>, %arg7: memref<1x256x128xbf16, #tpu.memory_space<vmem>>, %arg8: memref<64x128xf32, #tpu.memory_space<vmem>>, %arg9: memref<64x128xf32, #tpu.memory_space<vmem>>, %arg10: memref<1x1x64x128xbf16, #tpu.memory_space<vmem>>, %arg11: memref<1x1x64x128xbf16, #tpu.memory_space<vmem>>, %arg12: memref<1x1x64x128xbf16, #tpu.memory_space<vmem>>, %arg13: memref<64x256xbf16, #tpu.memory_space<vmem>>) attributes {dimension_semantics = [#tpu.dimension_semantics<parallel>, #tpu.dimension_semantics<parallel>, #tpu.dimension_semantics<arbitrary>], iteration_bounds = array<i64: 2, 2, 2>, scalar_prefetch = 0 : i64, scratch_operands = 1 : i64, tpu.core_type = #tpu.core_type<tc>, window_params = [{transform_indices = @transform_0, window_bounds = array<i64: 1, 64, 256>}, {pipeline_mode = #tpu.pipeline_mode<synchronous>, transform_indices = @transform_1, window_bounds = array<i64: 1, 256>}, {transform_indices = @transform_2, window_bounds = array<i64: 1, 256, 128>}, {transform_indices = @transform_3, window_bounds = array<i64: 1, 256, 128>}, {transform_indices = @transform_4, window_bounds = array<i64: 1, 256, 128>}, {transform_indices = @transform_5, window_bounds = array<i64: 64, 128>}, {transform_indices = @transform_6, window_bounds = array<i64: 64, 128>}, {transform_indices = @transform_7, window_bounds = array<i64: 1, 1, 64, 128>}, {transform_indices = @transform_8, window_bounds = array<i64: 1, 1, 64, 128>}, {transform_indices = @transform_9, window_bounds = array<i64: 1, 1, 64, 128>}]} {
    %c0_i32 = arith.constant 0 : i32
    %0 = arith.cmpi eq, %arg2, %c0_i32 : i32
    %1 = arith.extui %0 : i1 to i32
    %c0_i32_0 = arith.constant 0 : i32
    %2 = arith.cmpi ne, %1, %c0_i32_0 : i32
    scf.if %2 {
      %c0_30 = arith.constant 0 : index
      %c0_31 = arith.constant 0 : index
      %c0_32 = arith.constant 0 : index
      %35 = vector.load %arg3[%c0_30, %c0_31, %c0_32] : memref<1x64x256xf32, #tpu.memory_space<vmem>>, vector<1x64x256xf32>
      %36 = vector.shape_cast %35 : vector<1x64x256xf32> to vector<64x256xf32>
      %37 = arith.mulf %36, %36 : vector<64x256xf32>
      %cst_33 = arith.constant dense<0.000000e+00> : vector<64xf32>
      %38 = vector.multi_reduction <add>, %37, %cst_33 [1] : vector<64x256xf32> to vector<64xf32>
      %39 = vector.shape_cast %38 : vector<64xf32> to vector<64x1xf32>
      %cst_34 = arith.constant 2.560000e+02 : f32
      %40 = vector.broadcast %cst_34 : f32 to vector<64x1xf32>
      %41 = arith.divf %39, %40 : vector<64x1xf32>
      %cst_35 = arith.constant 9.99999974E-6 : f32
      %42 = vector.broadcast %cst_35 : f32 to vector<64x1xf32>
      %43 = arith.addf %41, %42 : vector<64x1xf32>
      %44 = math.rsqrt %43 : vector<64x1xf32>
      %45 = vector.broadcast %44 : vector<64x1xf32> to vector<64x256xf32>
      %46 = arith.mulf %36, %45 : vector<64x256xf32>
      %c0_36 = arith.constant 0 : index
      %c0_37 = arith.constant 0 : index
      %47 = vector.load %arg4[%c0_36, %c0_37] : memref<1x256xf32, #tpu.memory_space<vmem>>, vector<1x256xf32>
      %48 = vector.broadcast %47 : vector<1x256xf32> to vector<64x256xf32>
      %49 = arith.mulf %46, %48 : vector<64x256xf32>
      %50 = arith.truncf %49 : vector<64x256xf32> to vector<64x256xbf16>
      %c0_38 = arith.constant 0 : index
      %c0_39 = arith.constant 0 : index
      %51 = vector.load %arg13[%c0_38, %c0_39] : memref<64x256xbf16, #tpu.memory_space<vmem>>, vector<64x256xbf16>
      tpu.vector_store %arg13[%c0_38, %c0_39], %50 {strides = array<i32>} : memref<64x256xbf16, #tpu.memory_space<vmem>>, vector<64x256xbf16>,
    } else {
    }
    %c0 = arith.constant 0 : index
    %c0_1 = arith.constant 0 : index
    %3 = vector.load %arg13[%c0, %c0_1] : memref<64x256xbf16, #tpu.memory_space<vmem>>, vector<64x256xbf16>
    %c0_2 = arith.constant 0 : index
    %c0_3 = arith.constant 0 : index
    %c0_4 = arith.constant 0 : index
    %4 = vector.load %arg5[%c0_2, %c0_3, %c0_4] : memref<1x256x128xbf16, #tpu.memory_space<vmem>>, vector<1x256x128xbf16>
    %5 = vector.shape_cast %4 : vector<1x256x128xbf16> to vector<256x128xbf16>
    %cst = arith.constant dense<0.000000e+00> : vector<64x128xf32>
    %6 = tpu.matmul %3, %5, %cst {dimension_numbers = #tpu.dot_dimension_numbers<[1], [0], [0], [1], [0, 0, 1, 1], [], []>} : vector<64x256xbf16>, vector<256x128xbf16>, vector<64x128xf32> -> vector<64x128xf32>
    %c0_5 = arith.constant 0 : index
    %c0_6 = arith.constant 0 : index
    %c0_7 = arith.constant 0 : index
    %7 = vector.load %arg6[%c0_5, %c0_6, %c0_7] : memref<1x256x128xbf16, #tpu.memory_space<vmem>>, vector<1x256x128xbf16>
    %8 = vector.shape_cast %7 : vector<1x256x128xbf16> to vector<256x128xbf16>
    %cst_8 = arith.constant dense<0.000000e+00> : vector<64x128xf32>
    %9 = tpu.matmul %3, %8, %cst_8 {dimension_numbers = #tpu.dot_dimension_numbers<[1], [0], [0], [1], [0, 0, 1, 1], [], []>} : vector<64x256xbf16>, vector<256x128xbf16>, vector<64x128xf32> -> vector<64x128xf32>
    %c0_9 = arith.constant 0 : index
    %c0_10 = arith.constant 0 : index
    %c0_11 = arith.constant 0 : index
    %10 = vector.load %arg7[%c0_9, %c0_10, %c0_11] : memref<1x256x128xbf16, #tpu.memory_space<vmem>>, vector<1x256x128xbf16>
    %11 = vector.shape_cast %10 : vector<1x256x128xbf16> to vector<256x128xbf16>
    %cst_12 = arith.constant dense<0.000000e+00> : vector<64x128xf32>
    %12 = tpu.matmul %3, %11, %cst_12 {dimension_numbers = #tpu.dot_dimension_numbers<[1], [0], [0], [1], [0, 0, 1, 1], [], []>} : vector<64x256xbf16>, vector<256x128xbf16>, vector<64x128xf32> -> vector<64x128xf32>
    %c0_13 = arith.constant 0 : index
    %c0_14 = arith.constant 0 : index
    %13 = vector.load %arg8[%c0_13, %c0_14] : memref<64x128xf32, #tpu.memory_space<vmem>>, vector<64x128xf32>
    %c0_15 = arith.constant 0 : index
    %c0_16 = arith.constant 0 : index
    %14 = vector.load %arg9[%c0_15, %c0_16] : memref<64x128xf32, #tpu.memory_space<vmem>>, vector<64x128xf32>
    %15 = arith.mulf %6, %13 : vector<64x128xf32>
    %c64_i32 = arith.constant 64 : i32
    %16 = tpu.dynamic_rotate %6 by %c64_i32 dim 1 : vector<64x128xf32>, i32 -> vector<64x128xf32>
    %17 = arith.mulf %16, %14 : vector<64x128xf32>
    %18 = arith.addf %15, %17 : vector<64x128xf32>
    %19 = arith.mulf %9, %13 : vector<64x128xf32>
    %c64_i32_17 = arith.constant 64 : i32
    %20 = tpu.dynamic_rotate %9 by %c64_i32_17 dim 1 : vector<64x128xf32>, i32 -> vector<64x128xf32>
    %21 = arith.mulf %20, %14 : vector<64x128xf32>
    %22 = arith.addf %19, %21 : vector<64x128xf32>
    %23 = arith.truncf %18 : vector<64x128xf32> to vector<64x128xbf16>
    %c0_18 = arith.constant 0 : index
    %c0_19 = arith.constant 0 : index
    %c0_20 = arith.constant 0 : index
    %c0_21 = arith.constant 0 : index
    %24 = vector.load %arg10[%c0_18, %c0_19, %c0_20, %c0_21] : memref<1x1x64x128xbf16, #tpu.memory_space<vmem>>, vector<1x1x64x128xbf16>
    %25 = vector.shape_cast %24 : vector<1x1x64x128xbf16> to vector<64x128xbf16>
    %26 = vector.shape_cast %23 : vector<64x128xbf16> to vector<1x1x64x128xbf16>
    tpu.vector_store %arg10[%c0_18, %c0_19, %c0_20, %c0_21], %26 {strides = array<i32>} : memref<1x1x64x128xbf16, #tpu.memory_space<vmem>>, vector<1x1x64x128xbf16>,
    %27 = arith.truncf %22 : vector<64x128xf32> to vector<64x128xbf16>
    %c0_22 = arith.constant 0 : index
    %c0_23 = arith.constant 0 : index
    %c0_24 = arith.constant 0 : index
    %c0_25 = arith.constant 0 : index
    %28 = vector.load %arg11[%c0_22, %c0_23, %c0_24, %c0_25] : memref<1x1x64x128xbf16, #tpu.memory_space<vmem>>, vector<1x1x64x128xbf16>
    %29 = vector.shape_cast %28 : vector<1x1x64x128xbf16> to vector<64x128xbf16>
    %30 = vector.shape_cast %27 : vector<64x128xbf16> to vector<1x1x64x128xbf16>
    tpu.vector_store %arg11[%c0_22, %c0_23, %c0_24, %c0_25], %30 {strides = array<i32>} : memref<1x1x64x128xbf16, #tpu.memory_space<vmem>>, vector<1x1x64x128xbf16>,
    %31 = arith.truncf %12 : vector<64x128xf32> to vector<64x128xbf16>
    %c0_26 = arith.constant 0 : index
    %c0_27 = arith.constant 0 : index
    %c0_28 = arith.constant 0 : index
    %c0_29 = arith.constant 0 : index
    %32 = vector.load %arg12[%c0_26, %c0_27, %c0_28, %c0_29] : memref<1x1x64x128xbf16, #tpu.memory_space<vmem>>, vector<1x1x64x128xbf16>
    %33 = vector.shape_cast %32 : vector<1x1x64x128xbf16> to vector<64x128xbf16>
    %34 = vector.shape_cast %31 : vector<64x128xbf16> to vector<1x1x64x128xbf16>
    tpu.vector_store %arg12[%c0_26, %c0_27, %c0_28, %c0_29], %34 {strides = array<i32>} : memref<1x1x64x128xbf16, #tpu.memory_space<vmem>>, vector<1x1x64x128xbf16>,
    return
  }
  func.func @transform_0(%arg0: i32, %arg1: i32, %arg2: i32) -> (i32, i32, i32) {
    %c0_i32 = arith.constant 0 : i32
    %c0_i32_0 = arith.constant 0 : i32
    return %arg0, %arg1, %c0_i32 : i32, i32, i32
  }
  func.func @transform_1(%arg0: i32, %arg1: i32, %arg2: i32) -> (i32, i32) {
    %c0_i32 = arith.constant 0 : i32
    %c0_i32_0 = arith.constant 0 : i32
    %c0_i32_1 = arith.constant 0 : i32
    return %c0_i32, %c0_i32_0 : i32, i32
  }
  func.func @transform_2(%arg0: i32, %arg1: i32, %arg2: i32) -> (i32, i32, i32) {
    %c0_i32 = arith.constant 0 : i32
    %c0_i32_0 = arith.constant 0 : i32
    %c0_i32_1 = arith.constant 0 : i32
    return %arg2, %c0_i32, %c0_i32_0 : i32, i32, i32
  }
  func.func @transform_3(%arg0: i32, %arg1: i32, %arg2: i32) -> (i32, i32, i32) {
    %c0_i32 = arith.constant 0 : i32
    %c0_i32_0 = arith.constant 0 : i32
    %c0_i32_1 = arith.constant 0 : i32
    return %arg2, %c0_i32, %c0_i32_0 : i32, i32, i32
  }
  func.func @transform_4(%arg0: i32, %arg1: i32, %arg2: i32) -> (i32, i32, i32) {
    %c0_i32 = arith.constant 0 : i32
    %c0_i32_0 = arith.constant 0 : i32
    %c0_i32_1 = arith.constant 0 : i32
    return %arg2, %c0_i32, %c0_i32_0 : i32, i32, i32
  }
  func.func @transform_5(%arg0: i32, %arg1: i32, %arg2: i32) -> (i32, i32) {
    %c0_i32 = arith.constant 0 : i32
    %c0_i32_0 = arith.constant 0 : i32
    return %arg1, %c0_i32 : i32, i32
  }
  func.func @transform_6(%arg0: i32, %arg1: i32, %arg2: i32) -> (i32, i32) {
    %c0_i32 = arith.constant 0 : i32
    %c0_i32_0 = arith.constant 0 : i32
    return %arg1, %c0_i32 : i32, i32
  }
  func.func @transform_7(%arg0: i32, %arg1: i32, %arg2: i32) -> (i32, i32, i32, i32) {
    %c0_i32 = arith.constant 0 : i32
    %c0_i32_0 = arith.constant 0 : i32
    return %arg0, %arg2, %arg1, %c0_i32 : i32, i32, i32, i32
  }
  func.func @transform_8(%arg0: i32, %arg1: i32, %arg2: i32) -> (i32, i32, i32, i32) {
    %c0_i32 = arith.constant 0 : i32
    %c0_i32_0 = arith.constant 0 : i32
    return %arg0, %arg2, %arg1, %c0_i32 : i32, i32, i32, i32
  }
  func.func @transform_9(%arg0: i32, %arg1: i32, %arg2: i32) -> (i32, i32, i32, i32) {
    %c0_i32 = arith.constant 0 : i32
    %c0_i32_0 = arith.constant 0 : i32
    return %arg0, %arg2, %arg1, %c0_i32 : i32, i32, i32, i32
  }
}

</mosaic_0001>

<bundles_post_ra>
// kernel: tpu_custom_call.1
= control target key start
LH: loop header
LB: loop body
LE: loop exit
PB: predicated region body
PF: predicated region fallthrough
CT: control target
= control target key end

     0   :  { %s4024_s0 = inlined_call_operand.hbm [shape: f32[2,128,256], index: 0, kind: input, shape index: {}]   ;;  %s4025_s1 = inlined_call_operand.vmem [shape: f32[1,256], index: 1, kind: input, shape index: {}]   ;;  %s4026_s2 = inlined_call_operand.hbm [shape: bf16[2,256,128], index: 2, kind: input, shape index: {}]   ;;  %s4027_s3 = inlined_call_operand.hbm [shape: bf16[2,256,128], index: 3, kind: input, shape index: {}]   ;;  %s4028_s4 = inlined_call_operand.hbm [shape: bf16[2,256,128], index: 4, kind: input, shape index: {}]   ;;  %s4029_s5 = inlined_call_operand.hbm [shape: f32[128,128], index: 5, kind: input, shape index: {}]   ;;  %s4030_s6 = inlined_call_operand.hbm [shape: f32[128,128], index: 6, kind: input, shape index: {}]   ;;  %s4031_s7 = inlined_call_operand.hbm [shape: bf16[2,2,128,128], index: 7, kind: output, shape index: {0}]   ;;  %s4032_s8 = inlined_call_operand.hbm [shape: bf16[2,2,128,128], index: 8, kind: output, shape index: {1}]   ;;  %s4033_s9 = inlined_call_operand.hbm [shape: bf16[2,2,128,128], index: 9, kind: output, shape index: {2}]  }
   0x1   :  { %4079 = sst [smem:[#allocation48_spill]] %s4024_s0 }
   0x2   :  { %4080 = sst [smem:[#allocation49_spill]] %s4025_s1 }
   0x3   :  { %4081 = sst [smem:[#allocation50_spill]] %s4026_s2 }
   0x4   :  { %4082 = sst [smem:[#allocation51_spill]] %s4027_s3 }
   0x5   :  { %4083 = sst [smem:[#allocation52_spill]] %s4028_s4 }
   0x6   :  { %4084 = sst [smem:[#allocation53_spill]] %s4029_s5 }
   0x7   :  { %4085 = sst [smem:[#allocation54_spill]] %s4030_s6 }
   0x8   :  { %4086 = sst [smem:[#allocation55_spill]] %s4031_s7 }
   0x9   :  { %4087 = sst [smem:[#allocation56_spill]] %s4032_s8 }
   0xa   :  { %4088 = sst [smem:[#allocation57_spill]] %s4033_s9 }
   0xb   :  { %15 = vsyncpa [#allocation4], 0 }
   0xc   :  { %17 = vsyncpa [#allocation4 + $0x1], 0 }
   0xd   :  { %18 = vsyncpa [#allocation7], 0 }
   0xe   :  { %20 = vsyncpa [#allocation7 + $0x1], 0 }
   0xf   :  { %21 = vsyncpa [#allocation10], 0 }
  0x10   :  { %23 = vsyncpa [#allocation10 + $0x1], 0 }
  0x11   :  { %24 = vsyncpa [#allocation13], 0 }
  0x12   :  { %26 = vsyncpa [#allocation13 + $0x1], 0 }
  0x13   :  { %27 = vsyncpa [#allocation5], 0 }
  0x14   :  { %29 = vsyncpa [#allocation5 + $0x1], 0 }
  0x15   :  { %30 = vsyncpa [#allocation16], 0 }
  0x16   :  { %32 = vsyncpa [#allocation16 + $0x1], 0  ;;  %s3043_s30 = smov 0   ;;  %s3045_s10 = smov 0  }
  0x17   :  { %4089 = sst [smem:[#allocation25_spill]] %s3045_s10  ;;  %s3047_s11 = smov 0  }
  0x18   :  { %s3049_s12 = smov 0   ;;  %s3051_s13 = smov 0  }
  0x19   :  { %4090 = sst [smem:[#allocation26_spill]] %s3051_s13  ;;  %s3053_s14 = smov 0  }
  0x1a   :  { %s3055_s15 = smov 0   ;;  %s3057_s16 = smov 0  }
  0x1b   :  { %s3059_s17 = smov 0   ;;  %s3061_s18 = smov 0  }
  0x1c   :  { %s3063_s19 = smov 0   ;;  %s3065_s20 = smov 0  }
  0x1d   :  { %s3067_s21 = smov 0   ;;  %s3069_s22 = smov 0  }
  0x1e   :  { %s3071_s23 = smov 0   ;;  %s3073_s24 = smov 0  }
  0x1f   :  { %s3075_s25 = smov 0   ;;  %s3077_s26 = smov 0  }
  0x20   :  { %s3079_s27 = smov 0  }
  0x21 LB: > { %s4093_s10 = sld [smem:[#allocation25_spill]]  ;;  %s4094_s13 = sld [smem:[#allocation26_spill]]  ;;  %s2974_s27 = sphi %s3079_s27, %s38_s27   ;;  %s2970_s26 = sphi %s3077_s26, %s4208_s26   ;;  %s2966_s25 = sphi %s3075_s25, %s4207_s25   ;;  %s2962_s24 = sphi %s3073_s24, %s4196_s24   ;;  %s2958_s23 = sphi %s3071_s23, %s4206_s23   ;;  %s2954_s22 = sphi %s3069_s22, %s4205_s22   ;;  %s2950_s21 = sphi %s3067_s21, %s4195_s21   ;;  %s2946_s20 = sphi %s3065_s20, %s4204_s20   ;;  %s2942_s19 = sphi %s3063_s19, %s4203_s19   ;;  %s2938_s18 = sphi %s3061_s18, %s4194_s18   ;;  %s2934_s17 = sphi %s3059_s17, %s4193_s17   ;;  %s2930_s16 = sphi %s3057_s16, %s4192_s16   ;;  %s2926_s15 = sphi %s3055_s15, %s4191_s15   ;;  %s2922_s14 = sphi %s3053_s14, %s4202_s14   ;;  %s2914_s12 = sphi %s3049_s12, %s4189_s12   ;;  %s2910_s11 = sphi %s3047_s11, %s4200_s11   ;;  %s2902_s30 = sphi %s3043_s30, %s4188_s30  }
  0x22   : > { %4095 = sst [smem:[#allocation25_spill]] %s2902_s30  ;;  %s3137_s28 = sadd.s32 4294967295, %s2974_s27  }
  0x23   : > { %4097 = sst [smem:[#allocation27_spill]] %s2914_s12  ;;  %s50_s29 = sadd.s32 1, %s2962_s24 }
  0x24   : > { %4099 = sst [smem:[#allocation29_spill]] %s2922_s14  ;;  %p3140_p0 = scmp.ge.s32.totalorder %s50_s29, 2 }
  0x25   : > { %4100 = sst [smem:[#allocation30_spill]] %s2930_s16  ;;  %p4048_p1 = scmp.eq.s32.totalorder %s2974_s27, 0 }
  0x26   : > { %4101 = sst [smem:[#allocation31_spill]] %s2934_s17  ;;  %p4047_p2 = scmp.eq.s32.totalorder %s3137_s28, 0 }
  0x27   : > { %4096 = sst [smem:[#allocation26_spill]] %s4093_s10  ;;  %s113_s9 = sadd.s32 1, %s2934_s17 }
  0x28   : > { %4098 = sst [smem:[#allocation28_spill]] %s4094_s13  ;;  %s4210_s29 = smov (%p3140_p0, %s50_s29), 0 }
  0x29   : > { %4102 = sst [smem:[#allocation32_spill]] %s2942_s19  ;;  %p120_p3 = scmp.ne.s32.totalorder %s2934_s17, %s2930_s16 }
  0x2a   : > { %4103 = sst [smem:[#allocation33_spill]] %s2950_s21  ;;  %p126_p4 = scmp.ne.s32.totalorder %s2930_s16, %s2926_s15 }
  0x2b   : > { %4104 = sst [smem:[#allocation34_spill]] %s2954_s22  ;;  %s3156_s8 = ssub.s32 %s2962_s24, %s4210_s29 }
  0x2c   : > { %4105 = sst [smem:[#allocation35_spill]] %s2958_s23  ;;  %p111_p6 = scmp.eq.s32.totalorder %s3156_s8, 0 }
  0x2d   : > { %4106 = sst [smem:[#allocation36_spill]] %s2962_s24  ;;  %p122_p7 = por %p120_p3, %p4048_p1 }
  0x2e   : > { %4107 = sst [smem:[#allocation37_spill]] %s3137_s28  ;;  %p3164_p8 = por %p126_p4, %p4047_p2 }
  0x2f   : > { %s4108_s7 = scalar_select %p3140_p0, 1, 0 }
  0x30   : > { %4109 = sst [smem:[#allocation38_spill]] %s4210_s29  ;;  %p4046_p9 = scmp.lt.s32.totalorder %s2974_s27, 8 }
  0x31   : > { %s4110_s23 = scalar_select %p3164_p8, 1, 0 }
  0x32   : > { %s3169_s22 = scalar_select %p111_p6, %s2934_s17, %s113_s9  }
  0x33   : > { %4111 = sst [smem:[#allocation39_spill]] %s4110_s23  ;;  %s373_s21 = sand.u32 1, %s2934_s17  }
  0x34   : > { %4112 = sst [smem:[#allocation40_spill]] %s3169_s22  ;;  %s3174_s6 = sshll.u32 %s373_s21, 7 }
  0x35   : > { %s3177_s15 = sshll.u32 %s2962_s24, 11  ;;  %s4113_s2 = sld [smem:[#allocation50_spill]] }
  0x36   : > { %s375_s9 = scalar_lea.vmem [#allocation6], %s3174_s6  ;;  %p3188_p10 = pnand %p4046_p9, %p122_p7 }
  0x37   : > { %s382_s22 = sshll.u32 %s375_s9, 4  ;;  %s4115_s21 = sand.u32 1, %s2974_s27   ;;  %s3192_s22 = int_to_ptr.vmem [resolvable:$true] %s382_s22 }
  0x38   : > { %s4114_s1 = scalar_select %p3188_p10, 1, 0 }
  0x39   : > { %s3196_s24 = scalar_lea.sflag [#allocation7], %s4115_s21  ;;  %p3202_p12 = pneg %p3188_p10 }
  0x3a   : > { %4116 = sst [smem:[#allocation41_spill]] %s3196_s24 }
  0x3b   : > { %s3183_s5 = scalar_lea.hbm %s4113_s2, %s3177_s15  ;;  %s2537_s23 = scalar_lea.hbm %s4113_s2, 4096 }
  0x3c   : > { %s2532_s16 = scalar_lea.hbm %s3183_s5, 2048  ;;  %p2538_p4 = scmp.lt.u32.totalorder %s3183_s5, %s4113_s2 }
  0x3d   : > { %p2533_p11 = scmp.ne.s32.totalorder %s3183_s5, %s2532_s16  ;;  %p2539_p6 = scmp.lt.u32.totalorder %s2537_s23, %s2532_s16 }
  0x3e   : > { %p2541_p9 = scmp.lt.u32.totalorder %s2532_s16, %s3183_s5 }
  0x3f   : > { %p2535_p13 = pnand %p3202_p12, %p2533_p11  ;;  %p2540_p7 = por %p2539_p6, %p2538_p4 }
  0x41   : > { %p2536_p3 = pneg %p2535_p13  ;;  %p2542_p5 = por %p2541_p9, %p2540_p7 }
  0x43   : > { %p2543_p2 = pnand %p2542_p5, %p2536_p3 }
  0x45   : > { %2546 = shalt.err (!%p2543_p2)
}
  0x46   : > { %s2547_s21 = scalar_lea.vmem %s3192_s22, 2048  ;;  %s2976_s17 = smov [#allocation6]  }
  0x47   : > { %p2548_p11 = scmp.ne.s32.totalorder %s3192_s22, %s2547_s21  ;;  %s2552_s9 = sshll.u32 %s2976_s17, 4  ;;  %s2553_s9 = int_to_ptr.vmem [resolvable:$false] %s2552_s9 }
  0x48   : > { %s2554_s12 = scalar_lea.vmem %s2553_s9, 4096  ;;  %p2555_p8 = scmp.lt.s32.totalorder %s3192_s22, %s2553_s9 }
  0x49   : > { %p2550_p13 = pnand %p2548_p11, %p3202_p12  ;;  %p2556_p0 = scmp.lt.s32.totalorder %s2554_s12, %s2547_s21 }
  0x4b   : > { %p2551_p1 = pneg %p2550_p13  ;;  %p2557_p4 = por %p2556_p0, %p2555_p8 }
  0x4d   : > { %p2558_p6 = pnand %p2557_p4, %p2551_p1 }
  0x4f   : > { %2561 = shalt.err (!%p2558_p6)
}
  0x50   : > { %s4051_s13 = smov 64   ;;  %s4053_s23 = smov 4  }
  0x51   : > { %2283 = dma.hbm_to_vmem [thread:$0]  (!%p3188_p10), %s3183_s5, 2048, %s3192_s22, %s3196_s24, %s4051_s13, %s4051_s13, %s4053_s23  }
  0x52   : > { %p1924_p0 = scmp.ge.s32.totalorder %s2974_s27, 1  ;;  %p474_p1 = scmp.lt.s32.totalorder %s2974_s27, 9 }
  0x53   : > { %s4120_s4 = sld [smem:[#allocation52_spill]]  ;;  %s417_s12 = scalar_lea.vmem [#allocation9], %s3174_s6 }
  0x54   : > { %p3231_p2 = pnand %p1924_p0, %p474_p1  ;;  %s424_s2 = sshll.u32 %s417_s12, 4  ;;  %s3242_s2 = int_to_ptr.vmem [resolvable:$true] %s424_s2 }
  0x55   : > { %s4121_s5 = sand.u32 1, %s2974_s27  }
  0x56   : > { %s4118_s16 = scalar_select %p3231_p2, 1, 0 }
  0x57   : > { %s3246_s22 = scalar_lea.sflag [#allocation10], %s4121_s5 }
  0x58   : > { %4119 = sst [smem:[#allocation42_spill]] %s4118_s16 }
  0x59   : > { %s3239_s9 = scalar_lea.hbm %s4120_s4, %s3177_s15  ;;  %4122 = sst [smem:[#allocation43_spill]] %s3246_s22 }
  0x5a   : > { %s2562_s13 = scalar_lea.hbm %s3239_s9, 2048  ;;  %s2567_s17 = scalar_lea.hbm %s4120_s4, 4096 }
  0x5b   : > { %p2563_p5 = scmp.ne.s32.totalorder %s3239_s9, %s2562_s13  ;;  %p2568_p3 = scmp.lt.u32.totalorder %s3239_s9, %s4120_s4 }
  0x5c   : > { %p2569_p7 = scmp.lt.u32.totalorder %s2567_s17, %s2562_s13  ;;  %p2571_p13 = scmp.lt.u32.totalorder %s2562_s13, %s3239_s9 }
  0x5d   : > { %p2565_p8 = pnand %p2563_p5, %p3202_p12 }
  0x5e   : > { %p2570_p11 = por %p2569_p7, %p2568_p3 }
  0x5f   : > { %p2566_p9 = pneg %p2565_p8 }
  0x60   : > { %p2572_p4 = por %p2571_p13, %p2570_p11 }
  0x62   : > { %p2573_p6 = pnand %p2572_p4, %p2566_p9 }
  0x64   : > { %2576 = shalt.err (!%p2573_p6)
}
  0x65   : > { %s2577_s12 = scalar_lea.vmem %s3242_s2, 2048  ;;  %s2979_s23 = smov [#allocation9]  }
  0x66   : > { %p2578_p0 = scmp.ne.s32.totalorder %s3242_s2, %s2577_s12  ;;  %s2582_s5 = sshll.u32 %s2979_s23, 4  ;;  %s2583_s5 = int_to_ptr.vmem [resolvable:$false] %s2582_s5 }
  0x67   : > { %s2584_s14 = scalar_lea.vmem %s2583_s5, 4096  ;;  %p2585_p8 = scmp.lt.s32.totalorder %s3242_s2, %s2583_s5 }
  0x68   : > { %p2580_p1 = pnand %p2578_p0, %p3202_p12  ;;  %p2586_p2 = scmp.lt.s32.totalorder %s2584_s14, %s2577_s12 }
  0x6a   : > { %p2581_p5 = pneg %p2580_p1  ;;  %p2587_p3 = por %p2586_p2, %p2585_p8 }
  0x6c   : > { %p2588_p7 = pnand %p2587_p3, %p2581_p5 }
  0x6e   : > { %2591 = shalt.err (!%p2588_p7)
}
  0x6f   : > { %s4123_s13 = smov 4   ;;  %s4124_s16 = smov 64  }
  0x70   : > { %2289 = dma.hbm_to_vmem [thread:$0]  (!%p3188_p10), %s3239_s9, 2048, %s3242_s2, %s3246_s22, %s4124_s16, %s4124_s16, %s4123_s13  }
  0x71   : > { %s4069_s21 = sadd.s32 4294967294, %s2974_s27   ;;  %s53_s17 = sadd.s32 1, %s2966_s25 }
  0x72   : > { %p4125_p2 = scmp.ne.s32.totalorder %s4108_s7, 0  ;;  %s57_s12 = sadd.s32 1, %s2970_s26 }
  0x73   : > { %s66_s23 = sadd.s32 1, %s2946_s20  ;;  %p73_p11 = scmp.ne.s32.totalorder %s2946_s20, %s2942_s19 }
  0x74   : > { %s4212_s17 = smov (!%p4125_p2, %s53_s17), %s2966_s25  ;;  %p79_p13 = scmp.ne.s32.totalorder %s2942_s19, %s2938_s18 }
  0x75   : > { %p55_p9 = scmp.ge.s32.totalorder %s4212_s17, 2  ;;  %s247_s5 = sadd.s32 1, %s2910_s11 }
  0x76   : > { %p4127_p4 = scmp.eq.s32.totalorder %s2974_s27, 0  ;;  %p4129_p1 = scmp.eq.s32.totalorder %s3137_s28, 0 }
  0x77   : > { %s4214_s17 = smov (%p55_p9, %s4212_s17), 0  ;;  %s4216_s12 = smov (!%p55_p9, %s57_s12), %s2970_s26 }
  0x78   : > { %4126 = sst [smem:[#allocation44_spill]] %s4214_s17  ;;  %s3290_s2 = ssub.s32 %s2966_s25, %s4214_s17 }
  0x79   : > { %p3294_p6 = por %p4127_p4, %p73_p11  ;;  %p59_p0 = scmp.ge.s32.totalorder %s4216_s12, 2 }
  0x7a   : > { %p3300_p5 = por %p4129_p1, %p79_p13  ;;  %p257_p3 = scmp.ne.s32.totalorder %s2910_s11, %s4093_s10 }
  0x7b   : > { %s4218_s12 = smov (%p59_p0, %s4216_s12), 0  ;;  %p4133_p7 = scmp.eq.s32.totalorder %s3137_s28, 7 }
  0x7c   : > { %s4130_s18 = scalar_select %p3300_p5, 1, 0 }
  0x7d   : > { %4132 = sst [smem:[#allocation46_spill]] %s4218_s12  ;;  %p3311_p2 = por %p4133_p7, %p257_p3 }
  0x7e   : > { %4131 = sst [smem:[#allocation45_spill]] %s4130_s18  ;;  %p263_p9 = scmp.ne.s32.totalorder %s4093_s10, %s2902_s30 }
  0x7f   : > { %s4134_s9 = scalar_select %p3311_p2, 1, 0 }
  0x80   : > { %s61_s14 = ssub.s32 %s2970_s26, %s4218_s12  ;;  %p264_p11 = scmp.eq.s32.totalorder %s4069_s21, 7 }
  0x81   : > { %4135 = sst [smem:[#allocation47_spill]] %s4134_s9  ;;  %s63_s4 = sor.u32 %s3290_s2, %s61_s14 }
  0x82   : > { %s242_s17 = sor.u32 %s3156_s8, %s61_s14  ;;  %p64_p13 = scmp.eq.s32.totalorder %s63_s4, 0 }
  0x83   : > { %s244_s18 = sor.u32 %s242_s17, %s3290_s2  ;;  %p3324_p0 = por %p264_p11, %p263_p9 }
  0x84   : > { %p245_p4 = scmp.eq.s32.totalorder %s244_s18, 0  ;;  %s347_s9 = sand.u32 1, %s2946_s20  }
  0x85   : > { %s4136_s19 = scalar_select %p3324_p0, 1, 0 }
  0x86   : > { %s3329_s22 = scalar_select %p64_p13, %s2946_s20, %s66_s23  }
  0x87   : > { %s3332_s28 = scalar_select %p245_p4, %s2910_s11, %s247_s5  }
  0x88   : > { %s2024_s30 = sshll.u32 %s2966_s25, 4  ;;  %s1904_s12 = sshll.u32 %s347_s9, 7 }
  0x89   : > { %s1907_s10 = sshll.u32 %s2970_s26, 5  ;;  %s351_s24 = scalar_lea.vmem [#allocation3], %s1904_s12 }
  0x8a   : > { %s358_s21 = sadd.s32 %s2024_s30, %s1907_s10  ;;  %s361_s8 = sshll.u32 %s351_s24, 4  ;;  %s3337_s8 = int_to_ptr.vmem [resolvable:$true] %s361_s8 }
  0x8b   : > { %s1908_s4 = sshll.u32 %s358_s21, 7  ;;  %s4137_s0 = sld [smem:[#allocation48_spill]] }
  0x8c   : > { %p4138_p1 = scmp.lt.s32.totalorder %s2974_s27, 8  ;;  %s3352_s30 = scalar_lea.sflag [#allocation4], %s347_s9 }
  0x8e   : > { %p3348_p3 = pnand %p4138_p1, %p3294_p6 }
  0x90   : > { %p2594_p9 = pneg %p3348_p3 }
  0x91   : > { %s3342_s14 = scalar_lea.hbm %s4137_s0, %s1908_s4  ;;  %s2597_s12 = scalar_lea.hbm %s4137_s0, 8192 }
  0x92   : > { %s2592_s10 = scalar_lea.hbm %s3342_s14, 2048  ;;  %p2598_p6 = scmp.lt.u32.totalorder %s3342_s14, %s4137_s0 }
  0x93   : > { %p2593_p7 = scmp.ne.s32.totalorder %s3342_s14, %s2592_s10  ;;  %p2599_p4 = scmp.lt.u32.totalorder %s2597_s12, %s2592_s10 }
  0x94   : > { %p2601_p8 = scmp.lt.u32.totalorder %s2592_s10, %s3342_s14 }
  0x95   : > { %p2595_p11 = pnand %p2594_p9, %p2593_p7  ;;  %p2600_p1 = por %p2599_p4, %p2598_p6 }
  0x97   : > { %p2596_p13 = pneg %p2595_p11  ;;  %p2602_p0 = por %p2601_p8, %p2600_p1 }
  0x99   : > { %p2603_p2 = pnand %p2602_p0, %p2596_p13 }
  0x9b   : > { %2606 = shalt.err (!%p2603_p2)
}
  0x9c   : > { %s2607_s9 = scalar_lea.vmem %s3337_s8, 2048  ;;  %s2980_s4 = smov [#allocation3]  }
  0x9d   : > { %p2608_p7 = scmp.ne.s32.totalorder %s3337_s8, %s2607_s9  ;;  %s2612_s17 = sshll.u32 %s2980_s4, 4  ;;  %s2613_s17 = int_to_ptr.vmem [resolvable:$false] %s2612_s17 }
  0x9e   : > { %s2614_s18 = scalar_lea.vmem %s2613_s17, 4096  ;;  %p2615_p10 = scmp.lt.s32.totalorder %s3337_s8, %s2613_s17 }
  0x9f   : > { %p2610_p11 = pnand %p2608_p7, %p2594_p9  ;;  %p2616_p6 = scmp.lt.s32.totalorder %s2614_s18, %s2607_s9 }
  0xa1   : > { %p2611_p5 = pneg %p2610_p11  ;;  %p2617_p4 = por %p2616_p6, %p2615_p10 }
  0xa3   : > { %p2618_p8 = pnand %p2617_p4, %p2611_p5 }
  0xa5   : > { %2621 = shalt.err (!%p2618_p8)
}
  0xa6   : > { %s2981_s10 = smov 256   ;;  %s2982_s24 = smov 16  }
  0xa7   : > { %2280 = dma.hbm_to_vmem [thread:$0]  (!%p3348_p3), %s3342_s14, 2048, %s3337_s8, %s3352_s30, %s2981_s10, %s2981_s10, %s2982_s24  }
  0xa8   : > { %s4140_s3 = sld [smem:[#allocation51_spill]]  ;;  %s396_s7 = scalar_lea.vmem [#allocation8], %s3174_s6 }
  0xa9   : > { %s403_s9 = sshll.u32 %s396_s7, 4  ;;  %s3387_s9 = int_to_ptr.vmem [resolvable:$true] %s403_s9 }
  0xae   : > { %s3384_s5 = scalar_lea.hbm %s4140_s3, %s3177_s15  ;;  %s2627_s14 = scalar_lea.hbm %s4140_s3, 4096 }
  0xaf   : > { %s2622_s4 = scalar_lea.hbm %s3384_s5, 2048  ;;  %p2628_p0 = scmp.lt.u32.totalorder %s3384_s5, %s4140_s3 }
  0xb0   : > { %p2623_p10 = scmp.ne.s32.totalorder %s3384_s5, %s2622_s4  ;;  %p2629_p3 = scmp.lt.u32.totalorder %s2627_s14, %s2622_s4 }
  0xb1   : > { %p2631_p13 = scmp.lt.u32.totalorder %s2622_s4, %s3384_s5 }
  0xb2   : > { %p2625_p5 = pnand %p2623_p10, %p3202_p12  ;;  %p2630_p9 = por %p2629_p3, %p2628_p0 }
  0xb4   : > { %p2626_p2 = pneg %p2625_p5  ;;  %p2632_p1 = por %p2631_p13, %p2630_p9 }
  0xb6   : > { %p2633_p7 = pnand %p2632_p1, %p2626_p2 }
  0xb8   : > { %2636 = shalt.err (!%p2633_p7)
}
  0xb9   : > { %s2637_s6 = scalar_lea.vmem %s3387_s9, 2048  ;;  %s2983_s17 = smov [#allocation8]  }
  0xba   : > { %p2638_p11 = scmp.ne.s32.totalorder %s3387_s9, %s2637_s6  ;;  %s2642_s18 = sshll.u32 %s2983_s17, 4  ;;  %s2643_s18 = int_to_ptr.vmem [resolvable:$false] %s2642_s18 }
  0xbb   : > { %s2644_s10 = scalar_lea.vmem %s2643_s18, 4096  ;;  %p2645_p8 = scmp.lt.s32.totalorder %s3387_s9, %s2643_s18 }
  0xbc   : > { %p2640_p6 = pnand %p2638_p11, %p3202_p12  ;;  %p2646_p10 = scmp.lt.s32.totalorder %s2644_s10, %s2637_s6 }
  0xbe   : > { %p2641_p4 = pneg %p2640_p6  ;;  %p2647_p5 = por %p2646_p10, %p2645_p8 }
  0xc0   : > { %p2648_p0 = pnand %p2647_p5, %p2641_p4 }
  0xc2   : > { %2651 = shalt.err (!%p2648_p0)
}
  0xc3   : > { %p4141_p2 = scmp.ne.s32.totalorder %s4114_s1, 0  ;;  %s4142_s24 = sld [smem:[#allocation41_spill]] }
  0xc4   : > { %s4143_s29 = sld [smem:[#allocation29_spill]]  ;;  %s4144_s21 = sld [smem:[#allocation28_spill]] }
  0xc5   : > { %s4145_s12 = sld [smem:[#allocation27_spill]]  ;;  %s4146_s7 = sld [smem:[#allocation37_spill]] }
  0xc6   : > { %p4147_p12 = scmp.eq.s32.totalorder %s3290_s2, 0  ;;  %s2028_s8 = sshll.u32 %s2966_s25, 10 }
  0xc7   : > { %p4148_p13 = scmp.eq.s32.totalorder %s2974_s27, 0  ;;  %s4151_s2 = sld [smem:[#allocation53_spill]] }
  0xc8   : > { %p4152_p6 = scmp.lt.s32.totalorder %s2974_s27, 8 }
  0xc9   : > { %2286 = dma.hbm_to_vmem [thread:$0]  (!%p4141_p2), %s3384_s5, 2048, %s3387_s9, %s4142_s24, %s4124_s16, %s4124_s16, %s4123_s13  }
  0xca   : > { %s191_s1 = sadd.s32 1, %s4143_s29  ;;  %p198_p3 = scmp.ne.s32.totalorder %s4143_s29, %s4144_s21 }
  0xcb   : > { %s3418_s4 = scalar_select %p4147_p12, %s4143_s29, %s191_s1  }
  0xcc   : > { %p204_p9 = scmp.ne.s32.totalorder %s4144_s21, %s4145_s12  ;;  %s436_s23 = sand.u32 1, %s4143_s29  }
  0xcd   : > { %p200_p1 = por %p198_p3, %p4148_p13  ;;  %p4149_p7 = scmp.eq.s32.totalorder %s4146_s7, 0 }
  0xce   : > { %s3436_s30 = sshll.u32 %s436_s23, 6  ;;  %s3443_s5 = scalar_lea.hbm %s4151_s2, %s2028_s8 }
  0xcf   : > { %p3430_p11 = por %p204_p9, %p4149_p7  ;;  %p3447_p4 = pnand %p4152_p6, %p200_p1 }
  0xd0   : > { %s438_s15 = scalar_lea.vmem [#allocation11], %s3436_s30  ;;  %s2652_s17 = scalar_lea.hbm %s3443_s5, 1024 }
  0xd1   : > { %s445_s6 = sshll.u32 %s438_s15, 4  ;;  %p2653_p8 = scmp.ne.s32.totalorder %s3443_s5, %s2652_s17  ;;  %s3452_s6 = int_to_ptr.vmem [resolvable:$true] %s445_s6 }
  0xd2   : > { %p2654_p10 = pneg %p3447_p4  ;;  %s2657_s24 = scalar_lea.hbm %s4151_s2, 2048 }
  0xd3   : > { %p2658_p2 = scmp.lt.u32.totalorder %s3443_s5, %s4151_s2  ;;  %p2659_p12 = scmp.lt.u32.totalorder %s2657_s24, %s2652_s17 }
  0xd4   : > { %p2655_p5 = pnand %p2654_p10, %p2653_p8  ;;  %p2661_p9 = scmp.lt.u32.totalorder %s2652_s17, %s3443_s5 }
  0xd5   : > { %p2660_p3 = por %p2659_p12, %p2658_p2 }
  0xd6   : > { %p2656_p0 = pneg %p2655_p5 }
  0xd7   : > { %p2662_p13 = por %p2661_p9, %p2660_p3 }
  0xd9   : > { %p2663_p1 = pnand %p2662_p13, %p2656_p0 }
  0xdb   : > { %2666 = shalt.err (!%p2663_p1)
}
  0xdc   : > { %s2667_s7 = scalar_lea.vmem %s3452_s6, 1024  ;;  %s2984_s1 = smov [#allocation11]  }
  0xdd   : > { %p2668_p7 = scmp.ne.s32.totalorder %s3452_s6, %s2667_s7  ;;  %s2672_s13 = sshll.u32 %s2984_s1, 4  ;;  %s2673_s13 = int_to_ptr.vmem [resolvable:$false] %s2672_s13 }
  0xde   : > { %s2674_s16 = scalar_lea.vmem %s2673_s13, 2048  ;;  %p2675_p5 = scmp.lt.s32.totalorder %s3452_s6, %s2673_s13 }
  0xdf   : > { %p2670_p6 = pnand %p2668_p7, %p2654_p10  ;;  %p2676_p2 = scmp.lt.s32.totalorder %s2674_s16, %s2667_s7 }
  0xe1   : > { %p2671_p8 = pneg %p2670_p6  ;;  %p2677_p12 = por %p2676_p2, %p2675_p5 }
  0xe3   : > { %p2678_p3 = pnand %p2677_p12, %p2671_p8 }
  0xe5   : > { %2681 = shalt.err (!%p2678_p3)
}
  0xe6   : > { %s2985_s15 = smov 128   ;;  %s4154_s17 = sld [smem:[#allocation43_spill]] }
  0xe7   : > { %s2986_s18 = smov 8   ;;  %s4155_s21 = sld [smem:[#allocation54_spill]] }
  0xe8   : > { %s459_s1 = scalar_lea.vmem [#allocation12], %s3436_s30  ;;  %s3495_s16 = scalar_lea.sflag [#allocation13], %s436_s23 }
  0xe9   : > { %s466_s13 = sshll.u32 %s459_s1, 4  ;;  %s3491_s13 = int_to_ptr.vmem [resolvable:$true] %s466_s13 }
  0xec   : > { %2292 = dma.hbm_to_vmem [thread:$0]  (!%p3447_p4), %s3443_s5, 1024, %s3452_s6, %s4154_s17, %s2985_s15, %s2985_s15, %s2986_s18  }
  0xed   : > { %s4156_s7 = smov %s4155_s21  ;;  %s3488_s12 = scalar_lea.hbm %s4155_s21, %s2028_s8 }
  0xee   : > { %s2682_s0 = scalar_lea.hbm %s3488_s12, 1024  ;;  %s2687_s6 = scalar_lea.hbm %s4156_s7, 2048 }
  0xef   : > { %p2683_p0 = scmp.ne.s32.totalorder %s3488_s12, %s2682_s0  ;;  %p2688_p1 = scmp.lt.u32.totalorder %s3488_s12, %s4156_s7 }
  0xf0   : > { %p2689_p7 = scmp.lt.u32.totalorder %s2687_s6, %s2682_s0  ;;  %p2691_p8 = scmp.lt.u32.totalorder %s2682_s0, %s3488_s12 }
  0xf1   : > { %p2685_p9 = pnand %p2683_p0, %p2654_p10 }
  0xf2   : > { %p2690_p6 = por %p2689_p7, %p2688_p1 }
  0xf3   : > { %p2686_p13 = pneg %p2685_p9 }
  0xf4   : > { %p2692_p5 = por %p2691_p8, %p2690_p6 }
  0xf6   : > { %p2693_p2 = pnand %p2692_p5, %p2686_p13 }
  0xf8   : > { %2696 = shalt.err (!%p2693_p2)
}
  0xf9   : > { %s2697_s29 = scalar_lea.vmem %s3491_s13, 1024  ;;  %s2987_s23 = smov [#allocation12]  }
  0xfa   : > { %p2698_p12 = scmp.ne.s32.totalorder %s3491_s13, %s2697_s29  ;;  %s2702_s30 = sshll.u32 %s2987_s23, 4  ;;  %s2703_s30 = int_to_ptr.vmem [resolvable:$false] %s2702_s30 }
  0xfb   : > { %s2704_s24 = scalar_lea.vmem %s2703_s30, 2048  ;;  %p2705_p9 = scmp.lt.s32.totalorder %s3491_s13, %s2703_s30 }
  0xfc   : > { %p2700_p3 = pnand %p2698_p12, %p2654_p10  ;;  %p2706_p1 = scmp.lt.s32.totalorder %s2704_s24, %s2697_s29 }
  0xfe   : > { %p2701_p0 = pneg %p2700_p3  ;;  %p2707_p7 = por %p2706_p1, %p2705_p9 }
 0x100   : > { %p2708_p6 = pnand %p2707_p7, %p2701_p0 }
 0x102   : > { %2711 = shalt.err (!%p2708_p6)
}
 0x103   : > { %2295 = dma.hbm_to_vmem [thread:$0]  (!%p3447_p4), %s3488_s12, 1024, %s3491_s13, %s3495_s16, %s2985_s15, %s2985_s15, %s2986_s18  }
 0x104   : > { %s4157_s0 = sld [smem:[#allocation42_spill]] }
 0x10a   : > { %p4158_p10 = scmp.ne.s32.totalorder %s4157_s0, 0 }
 0x10b   : > { %s4159_s21 = sld [smem:[#allocation32_spill]] (!%p4158_p10)  ;;  %s4160_s1 = sld [smem:[#allocation45_spill]] (!%p4158_p10) }
 0x10c   : > { %478 = sbr.rel (%p4158_p10) target bundleno = 951 (0x3b7), region = 48 }
 0x111   : > { %s480_s5 = sand.u32 (!%p4158_p10), 1, %s4159_s21   ;;  %p4161_p13 = scmp.ne.s32.totalorder (!%p4158_p10), %s4160_s1, 0 }
 0x112   : > { %s1925_s8 = sshll.u32 (!%p4158_p10), %s480_s5, 7  ;;  %s481_s6 = scalar_lea.sflag (!%p4158_p10), [#allocation4], %s480_s5 }
 0x113   : > { %s3527_s17 = scalar_lea.vmem [#allocation3], %s1925_s8 }
 0x114   : > { %2873 = dma.done.wait (%p4161_p13), %s481_s6, 2048  }
 0x115   : > { %2875 = vsyncadd (%p4161_p13), %s481_s6, 4294965248  ;;  %s4162_s9 = sld [smem:[#allocation37_spill]]  ;;  %s4163_s10 = sld [smem:[#allocation30_spill]] }
 0x116   : > { %s4164_s29 = sld [smem:[#allocation39_spill]] }
 0x11b   : > { %s3534_s23 = sand.u32 1, %s4162_s9   ;;  %s491_s15 = sand.u32 1, %s4163_s10  }
 0x11c   : > { %s1926_s18 = sshll.u32 %s491_s15, 7  ;;  %s490_s12 = scalar_lea.sflag [#allocation7], %s3534_s23 }
 0x11d   : > { %s3538_s13 = scalar_lea.vmem [#allocation6], %s1926_s18  ;;  %p4165_p4 = scmp.ne.s32.totalorder %s4164_s29, 0 }
 0x11f   : > { %2877 = dma.done.wait (%p4165_p4), %s490_s12, 4096  }
 0x120   : > { %2879 = vsyncadd (%p4165_p4), %s490_s12, 4294963200  ;;  %s3544_s16 = scalar_lea.vmem [#allocation8], %s1926_s18  ;;  %s508_s30 = scalar_lea.sflag [#allocation10], %s3534_s23 }
 0x121   : > { %s3547_s24 = scalar_lea.vmem [#allocation9], %s1926_s18 }
 0x122   : > { %2881 = dma.done.wait (%p4165_p4), %s508_s30, 2048  }
 0x123   : > { %2883 = vsyncadd (%p4165_p4), %s508_s30, 4294965248  ;;  %s4166_s0 = sld [smem:[#allocation28_spill]] }
 0x129   : > { %s518_s21 = sand.u32 1, %s4166_s0  }
 0x12a   : > { %s1929_s1 = sshll.u32 %s518_s21, 6 }
 0x12b   : > { %s3554_s5 = scalar_lea.vmem [#allocation11], %s1929_s1 }
 0x12c   : > { %2885 = dma.done.wait (%p3430_p11), %s508_s30, 1024  }
 0x12d   : > { %2887 = vsyncadd (%p3430_p11), %s508_s30, 4294966272  ;;  %s526_s8 = scalar_lea.sflag [#allocation13], %s518_s21  ;;  %s3560_s6 = scalar_lea.vmem [#allocation12], %s1929_s1 }
 0x12e   : > { %2889 = dma.done.wait (%p3430_p11), %s526_s8, 1024  }
 0x12f   : > { %2891 = vsyncadd (%p3430_p11), %s526_s8, 4294966272  ;;  %s4167_s9 = sld [smem:[#allocation26_spill]]  ;;  %s4168_s30 = sld [smem:[#allocation33_spill]] }
 0x135   : > { %s4076_s10 = sand.u32 1, %s4167_s9   ;;  %p1934_p8 = scmp.ne.s32.totalorder %s4168_s30, 0 }
 0x136   : > { %s1931_s29 = sshll.u32 %s4076_s10, 5  ;;  %v3577_v0 = vld [vmem:[%s3527_s17 + $0x20] sm:$0xff] (!%p1934_p8)  ;;  %v3580_v1 = vld [vmem:[%s3527_s17 + $0x28] sm:$0xff] (!%p1934_p8)  ;;  %v3595_v7 = vld [vmem:[%s3527_s17 + $0x30] sm:$0xff] (!%p1934_p8)  ;;  %v709_v47 = vlaneseq (!%p1934_p8)  ;;  %s4169_s0 = sld [smem:[#allocation49_spill]] (!%p1934_p8) }
 0x137   : > { %s3569_s15 = scalar_lea.vmem [#allocation14], %s1931_s29  ;;  %s3571_s18 = scalar_lea.vmem [#allocation15], %s1931_s29  ;;  %v3583_v2 = vld [vmem:[%s3527_s17] sm:$0xff] (!%p1934_p8)  ;;  %v630_v3 = vmul.f32 (!%p1934_p8), %v3577_v0, %v3577_v0  ;;  %v631_v4 = vmul.f32 (!%p1934_p8), %v3580_v1, %v3580_v1  ;;  %v3590_v5 = vld [vmem:[%s3527_s17 + $0x8] sm:$0xff] (!%p1934_p8)  ;;  %v3598_v8 = vld [vmem:[%s3527_s17 + $0x38] sm:$0xff] (!%p1934_p8)  ;;  %v632_v10 = vmul.f32 (!%p1934_p8), %v3595_v7, %v3595_v7 }
 0x138   : > { %s3573_s12 = scalar_lea.vmem [#allocation17], %s1931_s29  ;;  %609 = sbr.rel (%p1934_p8) target bundleno = 492 (0x1ec), region = 76  ;;  %v626_v6 = vmul.f32 (!%p1934_p8), %v3583_v2, %v3583_v2  ;;  %v627_v9 = vmul.f32 (!%p1934_p8), %v3590_v5, %v3590_v5  ;;  %v633_v11 = vmul.f32 (!%p1934_p8), %v3598_v8, %v3598_v8  ;;  %v3607_v12 = vld [vmem:[%s3527_s17 + $0x10] sm:$0xff] (!%p1934_p8)  ;;  %v3610_v13 = vld [vmem:[%s3527_s17 + $0x18] sm:$0xff] (!%p1934_p8)  ;;  %v3623_v19 = vld [vmem:[%s3527_s17 + $0x40] sm:$0xff] (!%p1934_p8)  ;;  %v710_v54 = vshrl.u32 (!%p1934_p8), %v709_v47, 7 }
 0x139   : > { %v3613_v14 = vld [vmem:[%s3527_s17 + $0x50] sm:$0xff] (!%p1934_p8)  ;;  %v648_v15 = vadd.f32 (!%p1934_p8), %v631_v4, %v630_v3  ;;  %v628_v16 = vmul.f32 (!%p1934_p8), %v3607_v12, %v3607_v12  ;;  %v629_v17 = vmul.f32 (!%p1934_p8), %v3610_v13, %v3610_v13  ;;  %v3620_v18 = vld [vmem:[%s3527_s17 + $0x58] sm:$0xff] (!%p1934_p8)  ;;  %v3626_v20 = vld [vmem:[%s3527_s17 + $0x48] sm:$0xff] (!%p1934_p8)  ;;  %v634_v26 = vmul.f32 (!%p1934_p8), %v3623_v19, %v3623_v19 }
 0x13a   : > { %v642_v21 = vadd.f32 (!%p1934_p8), %v627_v9, %v626_v6  ;;  %v651_v22 = vadd.f32 (!%p1934_p8), %v633_v11, %v632_v10  ;;  %v636_v23 = vmul.f32 (!%p1934_p8), %v3613_v14, %v3613_v14  ;;  %v637_v24 = vmul.f32 (!%p1934_p8), %v3620_v18, %v3620_v18  ;;  %v3637_v28 = vld [vmem:[%s3527_s17 + $0x70] sm:$0xff] (!%p1934_p8)  ;;  %v3640_v29 = vld [vmem:[%s3527_s17 + $0x78] sm:$0xff] (!%p1934_p8)  ;;  %v3643_v30 = vld [vmem:[%s3527_s17 + $0x60] sm:$0xff] (!%p1934_p8) }
 0x13b   : > { %649 = vadd.xlane.f32.xlu1 (!%p1934_p8), %v648_v15  ;;  %v645_v25 = vadd.f32 (!%p1934_p8), %v629_v17, %v628_v16  ;;  %v635_v27 = vmul.f32 (!%p1934_p8), %v3626_v20, %v3626_v20  ;;  %v3646_v31 = vld [vmem:[%s3527_s17 + $0x68] sm:$0xff] (!%p1934_p8)  ;;  %v640_v33 = vmul.f32 (!%p1934_p8), %v3637_v28, %v3637_v28  ;;  %v641_v34 = vmul.f32 (!%p1934_p8), %v3640_v29, %v3640_v29 }
 0x13c   : > { %643 = vadd.xlane.f32.xlu0 (!%p1934_p8), %v642_v21  ;;  %v657_v32 = vadd.f32 (!%p1934_p8), %v637_v24, %v636_v23  ;;  %v638_v36 = vmul.f32 (!%p1934_p8), %v3643_v30, %v3643_v30  ;;  %v639_v37 = vmul.f32 (!%p1934_p8), %v3646_v31, %v3646_v31  ;;  %v711_v61 = vsub.s32 (!%p1934_p8), 0, %v710_v54  ;;  %v707_v3 = vld [vmem:[%s4169_s0] sm:$0x3] (!%p1934_p8) }
 0x13d   : > { %v654_v35 = vadd.f32 (!%p1934_p8), %v635_v27, %v634_v26  ;;  %v663_v38 = vadd.f32 (!%p1934_p8), %v641_v34, %v640_v33  ;;  %v715_v4 = vsub.s32 (!%p1934_p8), 1, %v710_v54 }
 0x13e   : > { %v660_v39 = vadd.f32 (!%p1934_p8), %v639_v37, %v638_v36  ;;  %v712_v16 = vrot.slane (!%p1934_p8), %v707_v3, %v711_v61 }
 0x13f   : > { %652 = vadd.xlane.f32.xlu1 %v651_v22  ;;  %v716_v17 = vrot.slane %v707_v3, %v715_v4 }
 0x140   : > { %646 = vadd.xlane.f32.xlu0 %v645_v25 }
 0x143   : > { %658 = vadd.xlane.f32.xlu1 %v657_v32 }
 0x144   : > { %655 = vadd.xlane.f32.xlu0 %v654_v35 }
 0x147   : > { %664 = vadd.xlane.f32.xlu1 %v663_v38 }
 0x148   : > { %661 = vadd.xlane.f32.xlu0 %v660_v39 }
 0x1c8   : > { %v650_v40 = vpop.xlane.xlu1 %649 }
 0x1c9   : > { %v669_v41 = vmul.f32 0.00390625, %v650_v40  ;;  %v644_v42 = vpop.xlane.xlu0 %643 }
 0x1ca   : > { %v667_v43 = vmul.f32 0.00390625, %v644_v42 }
 0x1cb   : > { %v677_v44 = vadd.f32 1e-05, %v669_v41 }
 0x1cc   : > { %v675_v45 = vadd.f32 1e-05, %v667_v43  ;;  %v653_v46 = vpop.xlane.xlu1 %652 }
 0x1cd   : > { %2468 = vrsqrt.f32 %v677_v44  ;;  %v670_v48 = vmul.f32 0.00390625, %v653_v46  ;;  %v647_v49 = vpop.xlane.xlu0 %646 }
 0x1ce   : > { %2470 = vrsqrt.f32 %v675_v45  ;;  %v668_v50 = vmul.f32 0.00390625, %v647_v49 }
 0x1cf   : > { %v678_v51 = vadd.f32 1e-05, %v670_v48 }
 0x1d0   : > { %v676_v52 = vadd.f32 1e-05, %v668_v50  ;;  %v659_v53 = vpop.xlane.xlu1 %658 }
 0x1d1   : > { %2472 = vrsqrt.f32 %v678_v51  ;;  %v672_v55 = vmul.f32 0.00390625, %v659_v53  ;;  %v656_v56 = vpop.xlane.xlu0 %655 }
 0x1d2   : > { %2474 = vrsqrt.f32 %v676_v52  ;;  %v671_v57 = vmul.f32 0.00390625, %v656_v56 }
 0x1d3   : > { %v680_v58 = vadd.f32 1e-05, %v672_v55 }
 0x1d4   : > { %v679_v59 = vadd.f32 1e-05, %v671_v57  ;;  %v665_v60 = vpop.xlane.xlu1 %664 }
 0x1d5   : > { %2476 = vrsqrt.f32 %v680_v58  ;;  %v674_v62 = vmul.f32 0.00390625, %v665_v60  ;;  %v662_v63 = vpop.xlane.xlu0 %661 }
 0x1d6   : > { %2478 = vrsqrt.f32 %v679_v59  ;;  %v673_v6 = vmul.f32 0.00390625, %v662_v63 }
 0x1d7   : > { %v2469_v9 = vpop.eup %2468  ;;  %v682_v10 = vadd.f32 1e-05, %v674_v62 }
 0x1d8   : > { %v2471_v11 = vpop.eup %2470  ;;  %v681_v15 = vadd.f32 1e-05, %v673_v6  ;;  %v695_v21 = vmul.f32 %v2469_v9, %v3577_v0  ;;  %v696_v22 = vmul.f32 %v2469_v9, %v3580_v1 }
 0x1d9   : > { %2480 = vrsqrt.f32 %v682_v10  ;;  %v691_v24 = vmul.f32 %v2471_v11, %v3583_v2  ;;  %v692_v25 = vmul.f32 %v2471_v11, %v3590_v5 }
 0x1da   : > { %2482 = vrsqrt.f32 %v681_v15  ;;  %v723_v35 = vmul.f32 %v712_v16, %v695_v21  ;;  %v724_v36 = vmul.f32 %v716_v17, %v696_v22 }
 0x1db   : > { %v2473_v23 = vpop.eup %2472  ;;  %v719_v38 = vmul.f32 %v712_v16, %v691_v24  ;;  %v720_v39 = vmul.f32 %v716_v17, %v692_v25 }
 0x1dc   : > { %v2475_v26 = vpop.eup %2474  ;;  %v697_v27 = vmul.f32 %v2473_v23, %v3595_v7  ;;  %v698_v32 = vmul.f32 %v2473_v23, %v3598_v8 }
 0x1dd   : > { %v693_v33 = vmul.f32 %v2475_v26, %v3607_v12  ;;  %v694_v34 = vmul.f32 %v2475_v26, %v3610_v13 }
 0x1de   : > { %v725_v0 = vmul.f32 %v712_v16, %v697_v27  ;;  %v726_v37 = vmul.f32 %v716_v17, %v698_v32 }
 0x1df   : > { %v2477_v1 = vpop.eup %2476  ;;  %v721_v40 = vmul.f32 %v712_v16, %v693_v33  ;;  %v722_v2 = vmul.f32 %v716_v17, %v694_v34 }
 0x1e0   : > { %v2479_v41 = vpop.eup %2478  ;;  %v737_v5 = vpack.c.bf16 %v725_v0, %v723_v35  ;;  %v738_v42 = vpack.c.bf16 %v726_v37, %v724_v36  ;;  %v701_v7 = vmul.f32 %v2477_v1, %v3613_v14  ;;  %v702_v8 = vmul.f32 %v2477_v1, %v3620_v18 }
 0x1e1   : > { %v735_v43 = vpack.c.bf16 %v721_v40, %v719_v38  ;;  %v736_v12 = vpack.c.bf16 %v722_v2, %v720_v39  ;;  %v699_v13 = vmul.f32 %v2479_v41, %v3623_v19  ;;  %v700_v44 = vmul.f32 %v2479_v41, %v3626_v20 }
 0x1e2   : > { %745 = vst [vmem:[#allocation2 + $0x10] sm:$0xff] %v737_v5  ;;  %746 = vst [vmem:[#allocation2 + $0x18] sm:$0xff] %v738_v42  ;;  %v729_v45 = vmul.f32 %v712_v16, %v701_v7  ;;  %v730_v46 = vmul.f32 %v716_v17, %v702_v8 }
 0x1e3   : > { %v2481_v47 = vpop.eup %2480  ;;  %743 = vst [vmem:[#allocation2] sm:$0xff] %v735_v43  ;;  %744 = vst [vmem:[#allocation2 + $0x8] sm:$0xff] %v736_v12  ;;  %v727_v48 = vmul.f32 %v712_v16, %v699_v13  ;;  %v728_v49 = vmul.f32 %v716_v17, %v700_v44 }
 0x1e4   : > { %v2483_v50 = vpop.eup %2482  ;;  %v705_v14 = vmul.f32 %v2481_v47, %v3637_v28  ;;  %v706_v18 = vmul.f32 %v2481_v47, %v3640_v29 }
 0x1e5   : > { %v739_v51 = vpack.c.bf16 %v729_v45, %v727_v48  ;;  %v740_v52 = vpack.c.bf16 %v730_v46, %v728_v49  ;;  %v703_v19 = vmul.f32 %v2483_v50, %v3643_v30  ;;  %v704_v20 = vmul.f32 %v2483_v50, %v3646_v31 }
 0x1e6   : > { %v733_v53 = vmul.f32 %v712_v16, %v705_v14  ;;  %v734_v54 = vmul.f32 %v716_v17, %v706_v18 }
 0x1e7   : > { %747 = vst [vmem:[#allocation2 + $0x20] sm:$0xff] %v739_v51  ;;  %748 = vst [vmem:[#allocation2 + $0x28] sm:$0xff] %v740_v52  ;;  %v731_v55 = vmul.f32 %v712_v16, %v703_v19  ;;  %v732_v56 = vmul.f32 %v716_v17, %v704_v20 }
 0x1e9   : > { %v741_v57 = vpack.c.bf16 %v733_v53, %v731_v55  ;;  %v742_v58 = vpack.c.bf16 %v734_v54, %v732_v56 }
 0x1eb   : > { %749 = vst [vmem:[#allocation2 + $0x30] sm:$0xff] %v741_v57  ;;  %750 = vst [vmem:[#allocation2 + $0x38] sm:$0xff] %v742_v58 }
 0x1ec PF: > { %v2484_v28 = vld [vmem:[%s3538_s13 + $0x40] sm:$0xff]   ;;  %v2488_v59 = vld [vmem:[%s3538_s13 + $0x48] sm:$0xff]   ;;  %v2492_v63 = vld [vmem:[%s3538_s13 + $0x50] sm:$0xff]   ;;  %s4172_s21 = sld [smem:[#allocation35_spill]]  ;;  %s1602_s17 = sshll.u32 %s3571_s18, 4  ;;  %s3855_s17 = int_to_ptr.vmem [resolvable:$true] %s1602_s17 }
 0x1ed   : > { %v2485_v29 = vld [vmem:[%s3544_s16 + $0x40] sm:$0xff]   ;;  %2123 = vmatprep.subr.bf16.mxu0 %v2484_v28  ;;  %v2489_v60 = vld [vmem:[%s3544_s16 + $0x48] sm:$0xff]   ;;  %v2493_v3 = vld [vmem:[%s3544_s16 + $0x50] sm:$0xff]   ;;  %s1560_s3 = scalar_lea.sflag [#allocation16], %s3534_s23  ;;  %s2712_s7 = scalar_lea.vmem %s3855_s17, 512 }
 0x1ee   : > { %v2486_v30 = vld [vmem:[%s3538_s13] sm:$0xff]   ;;  %2163 = vmatprep.subr.bf16.mxu1 %v2485_v29  ;;  %v2490_v61 = vld [vmem:[%s3538_s13 + $0x8] sm:$0xff]   ;;  %v2494_v4 = vld [vmem:[%s3538_s13 + $0x10] sm:$0xff]   ;;  %p2713_p11 = scmp.ne.s32.totalorder %s3855_s17, %s2712_s7 }
 0x1ef   : > { %v2487_v31 = vld [vmem:[%s3544_s16] sm:$0xff]   ;;  %2124 = vmatpush3.bf16.msra.mxu0 %v2486_v30  ;;  %v2491_v62 = vld [vmem:[%s3544_s16 + $0x8] sm:$0xff]   ;;  %v2495_v6 = vld [vmem:[%s3544_s16 + $0x10] sm:$0xff]  }
 0x1f0   : > { %2164 = vmatpush3.bf16.msra.mxu1 %v2487_v31  ;;  %2125 = vmatprep.subr.bf16.mxu0 %v2488_v59  ;;  %v2496_v9 = vld [vmem:[%s3538_s13 + $0x58] sm:$0xff]   ;;  %v2500_v16 = vld [vmem:[%s3538_s13 + $0x60] sm:$0xff]   ;;  %v2504_v23 = vld [vmem:[%s3538_s13 + $0x68] sm:$0xff]  }
 0x1f1   : > { %2165 = vmatprep.subr.bf16.mxu1 %v2489_v60  ;;  %v2497_v10 = vld [vmem:[%s3544_s16 + $0x58] sm:$0xff]   ;;  %v2501_v17 = vld [vmem:[%s3544_s16 + $0x60] sm:$0xff]   ;;  %v2505_v24 = vld [vmem:[%s3544_s16 + $0x68] sm:$0xff]  }
 0x1f2   : > { %v2498_v11 = vld [vmem:[%s3538_s13 + $0x18] sm:$0xff]   ;;  %v2502_v21 = vld [vmem:[%s3538_s13 + $0x20] sm:$0xff]   ;;  %v2506_v25 = vld [vmem:[%s3538_s13 + $0x28] sm:$0xff]   ;;  %s2012_s29 = sshll.u32 %s4172_s21, 5  ;;  %s1582_s21 = sshll.u32 %s3569_s15, 4  ;;  %s3870_s21 = int_to_ptr.vmem [resolvable:$true] %s1582_s21 }
 0x1f3   : > { %2126 = vmatpush3.bf16.msra.mxu0 %v2490_v61  ;;  %v2499_v15 = vld [vmem:[%s3544_s16 + $0x18] sm:$0xff]   ;;  %v2503_v22 = vld [vmem:[%s3544_s16 + $0x20] sm:$0xff]   ;;  %v2507_v26 = vld [vmem:[%s3544_s16 + $0x28] sm:$0xff]  }
 0x1f4   : > { %2166 = vmatpush3.bf16.msra.mxu1 %v2491_v62  ;;  %2127 = vmatprep.subr.bf16.mxu0 %v2492_v63  ;;  %v2508_v27 = vld [vmem:[%s3538_s13 + $0x70] sm:$0xff]   ;;  %v2512_v35 = vld [vmem:[%s3538_s13 + $0x78] sm:$0xff]   ;;  %v3707_v1 = vld [vmem:[#allocation2 + $0x8] sm:$0xff] }
 0x1f5   : > { %2167 = vmatprep.subr.bf16.mxu1 %v2493_v3  ;;  %v2509_v32 = vld [vmem:[%s3544_s16 + $0x70] sm:$0xff]   ;;  %v2513_v36 = vld [vmem:[%s3544_s16 + $0x78] sm:$0xff]   ;;  %v3709_v38 = vld [vmem:[#allocation2] sm:$0xff]  ;;  %919 = vmatprep.mubr.bf16.mxu0 %v3707_v1 }
 0x1f6   : > { %v2510_v33 = vld [vmem:[%s3538_s13 + $0x30] sm:$0xff]   ;;  %v2514_v0 = vld [vmem:[%s3538_s13 + $0x38] sm:$0xff]   ;;  %1112 = vmatprep.mubr.bf16.mxu1 %v3707_v1  ;;  %v2516_v40 = vld [vmem:[%s3547_s24 + $0x40] sm:$0xff]   ;;  %s4074_s13 = smov 64  }
 0x1f7   : > { %2128 = vmatpush3.bf16.msra.mxu0 %v2494_v4  ;;  %v2511_v34 = vld [vmem:[%s3544_s16 + $0x30] sm:$0xff]   ;;  %v2515_v37 = vld [vmem:[%s3544_s16 + $0x38] sm:$0xff]   ;;  %v2517_v2 = vld [vmem:[%s3547_s24] sm:$0xff]   ;;  %s4170_s16 = sld [smem:[#allocation34_spill]] }
 0x1f8   : > { %2168 = vmatpush3.bf16.msra.mxu1 %v2495_v6  ;;  %2129 = vmatprep.subr.bf16.mxu0 %v2496_v9  ;;  %v3713_v39 = vld [vmem:[#allocation2 + $0x18] sm:$0xff]  ;;  %v2518_v41 = vld [vmem:[%s3547_s24 + $0x48] sm:$0xff]   ;;  %v753_v42 = vld [vmem:[#allocation2 + $0x10] sm:$0xff] }
 0x1f9   : > { %2169 = vmatprep.subr.bf16.mxu1 %v2497_v10  ;;  %v2519_v5 = vld [vmem:[%s3547_s24 + $0x8] sm:$0xff]   ;;  %v2520_v8 = vld [vmem:[%s3547_s24 + $0x50] sm:$0xff]   ;;  %v2522_v12 = vld [vmem:[%s3547_s24 + $0x58] sm:$0xff]  }
 0x1fa   : > { %v756_v7 = vld [vmem:[#allocation2 + $0x28] sm:$0xff]  ;;  %v2521_v43 = vld [vmem:[%s3547_s24 + $0x10] sm:$0xff]   ;;  %v2523_v13 = vld [vmem:[%s3547_s24 + $0x18] sm:$0xff]  }
 0x1fb   : > { %2130 = vmatpush3.bf16.msra.mxu0 %v2498_v11  ;;  %v755_v44 = vld [vmem:[#allocation2 + $0x20] sm:$0xff]  ;;  %v758_v46 = vld [vmem:[#allocation2 + $0x38] sm:$0xff]  ;;  %v2526_v48 = vld [vmem:[%s3547_s24 + $0x68] sm:$0xff]  }
 0x1fc   : > { %2170 = vmatpush3.bf16.msra.mxu1 %v2499_v15  ;;  %2131 = vmatprep.subr.bf16.mxu0 %v2500_v16  ;;  %v2524_v45 = vld [vmem:[%s3547_s24 + $0x60] sm:$0xff]   ;;  %v2527_v49 = vld [vmem:[%s3547_s24 + $0x28] sm:$0xff]   ;;  %v2528_v50 = vld [vmem:[%s3547_s24 + $0x70] sm:$0xff]  }
 0x1fd   : > { %2171 = vmatprep.subr.bf16.mxu1 %v2501_v17  ;;  %v2525_v47 = vld [vmem:[%s3547_s24 + $0x20] sm:$0xff]   ;;  %v757_v14 = vld [vmem:[#allocation2 + $0x30] sm:$0xff]  ;;  %v2530_v51 = vld [vmem:[%s3547_s24 + $0x78] sm:$0xff]   ;;  %s2010_s1 = sshll.u32 %s4170_s16, 3  ;;  %s4173_s16 = sld [smem:[#allocation56_spill]] }
 0x1fe   : > { %v2529_v18 = vld [vmem:[%s3547_s24 + $0x30] sm:$0xff]   ;;  %v2531_v52 = vld [vmem:[%s3547_s24 + $0x38] sm:$0xff]   ;;  %s4171_s24 = sld [smem:[#allocation33_spill]] }
 0x1ff   : > { %2132 = vmatpush3.bf16.msra.mxu0 %v2502_v21 }
 0x200   : > { %2172 = vmatpush3.bf16.msra.mxu1 %v2503_v22  ;;  %2133 = vmatprep.subr.bf16.mxu0 %v2504_v23 }
 0x201   : > { %2173 = vmatprep.subr.bf16.mxu1 %v2505_v24 }
 0x203   : > { %2134 = vmatpush3.bf16.msra.mxu0 %v2506_v25 }
 0x204   : > { %2174 = vmatpush3.bf16.msra.mxu1 %v2507_v26  ;;  %2135 = vmatprep.subr.bf16.mxu0 %v2508_v27  ;;  %s2011_s8 = sshll.u32 %s4171_s24, 4 }
 0x205   : > { %2175 = vmatprep.subr.bf16.mxu1 %v2509_v32  ;;  %s1577_s9 = sadd.s32 %s2011_s8, %s2010_s1  ;;  %s4174_s1 = smov %s4173_s16 }
 0x206   : > { %s1579_s30 = sadd.s32 %s2012_s29, %s1577_s9  ;;  %s4175_s8 = sld [smem:[#allocation47_spill]] }
 0x207   : > { %2136 = vmatpush3.bf16.msra.mxu0 %v2510_v33  ;;  %s2013_s14 = sshll.u32 %s1579_s30, 6  ;;  %s2989_s9 = smov [#allocation15]  }
 0x208   : > { %2176 = vmatpush3.bf16.msra.mxu1 %v2511_v34  ;;  %2137 = vmatprep.subr.bf16.mxu0 %v2512_v35  ;;  %s3850_s24 = scalar_lea.hbm %s4173_s16, %s2013_s14  ;;  %s4178_s16 = sld [smem:[#allocation55_spill]] }
 0x209   : > { %2177 = vmatprep.subr.bf16.mxu1 %v2513_v36  ;;  %s2716_s29 = sshll.u32 %s2989_s9, 4  ;;  %s2717_s29 = int_to_ptr.vmem [resolvable:$false] %s2716_s29 }
 0x20a   : > { %p2719_p3 = scmp.lt.s32.totalorder %s3855_s17, %s2717_s29 }
 0x20b   : > { %2138 = vmatpush3.bf16.msra.mxu0 %v2514_v0 }
 0x20c   : > { %2178 = vmatpush3.bf16.msra.mxu1 %v2515_v37  ;;  %2203 = vmatprep.subr.bf16.mxu0 %v2516_v40  ;;  %p4180_p5 = scmp.ne.s32.totalorder %s4175_s8, 0 }
 0x20d   : > { %2243 = vmatprep.subr.bf16.mxu1 %v2516_v40 }
 0x20e   : > { %920 = vmatmul.mubr.bf16.vlgmr.msra.gmra.mrb[0].mxu0 %v3709_v38  ;;  %s4179_s10 = smov %s4178_s16  ;;  %s3868_s2 = scalar_lea.hbm %s4178_s16, %s2013_s14 }
 0x20f   : > { %1113 = vmatmul.mubr.bf16.vlgmr.msra.gmra.mrb[0].mxu1 %v3709_v38  ;;  %927 = vmatprep.mubr.bf16.mxu0 %v3713_v39  ;;  %p2714_p2 = pnand %p2713_p11, %p4180_p5 }
 0x210   : > { %1120 = vmatprep.mubr.bf16.mxu1 %v3713_v39  ;;  %2204 = vmatpush3.bf16.msra.mxu0 %v2517_v2 }
 0x211   : > { %2251 = vmatpush3.bf16.msra.mxu1 %v2517_v2  ;;  %2205 = vmatprep.subr.bf16.mxu0 %v2518_v41  ;;  %p2715_p12 = pneg %p2714_p2 }
 0x212   : > { %2244 = vmatprep.subr.bf16.mxu1 %v2518_v41 }
 0x214   : > { %2206 = vmatpush3.bf16.msra.mxu0 %v2519_v5 }
 0x215   : > { %2252 = vmatpush3.bf16.msra.mxu1 %v2519_v5  ;;  %2207 = vmatprep.subr.bf16.mxu0 %v2520_v8 }
 0x216   : > { %928 = vmatmul.mubr.bf16.gmra.mrb[4].mxu0 %v753_v42  ;;  %2245 = vmatprep.subr.bf16.mxu1 %v2520_v8 }
 0x217   : > { %1121 = vmatmul.mubr.bf16.gmra.mrb[4].mxu1 %v753_v42  ;;  %935 = vmatprep.mubr.bf16.mxu0 %v756_v7 }
 0x218   : > { %1128 = vmatprep.mubr.bf16.mxu1 %v756_v7  ;;  %2208 = vmatpush3.bf16.msra.mxu0 %v2521_v43 }
 0x219   : > { %2253 = vmatpush3.bf16.msra.mxu1 %v2521_v43  ;;  %2209 = vmatprep.subr.bf16.mxu0 %v2522_v12 }
 0x21a   : > { %2246 = vmatprep.subr.bf16.mxu1 %v2522_v12 }
 0x21c   : > { %2210 = vmatpush3.bf16.msra.mxu0 %v2523_v13 }
 0x21d   : > { %2254 = vmatpush3.bf16.msra.mxu1 %v2523_v13  ;;  %2211 = vmatprep.subr.bf16.mxu0 %v2524_v45 }
 0x21e   : > { %936 = vmatmul.mubr.bf16.gmra.mrb[8].mxu0 %v755_v44  ;;  %2247 = vmatprep.subr.bf16.mxu1 %v2524_v45 }
 0x21f   : > { %1129 = vmatmul.mubr.bf16.gmra.mrb[8].mxu1 %v755_v44  ;;  %943 = vmatprep.mubr.bf16.mxu0 %v758_v46 }
 0x220   : > { %1136 = vmatprep.mubr.bf16.mxu1 %v758_v46  ;;  %2212 = vmatpush3.bf16.msra.mxu0 %v2525_v47 }
 0x221   : > { %2255 = vmatpush3.bf16.msra.mxu1 %v2525_v47  ;;  %2213 = vmatprep.subr.bf16.mxu0 %v2526_v48 }
 0x222   : > { %2248 = vmatprep.subr.bf16.mxu1 %v2526_v48 }
 0x224   : > { %2214 = vmatpush3.bf16.msra.mxu0 %v2527_v49 }
 0x225   : > { %2256 = vmatpush3.bf16.msra.mxu1 %v2527_v49  ;;  %2215 = vmatprep.subr.bf16.mxu0 %v2528_v50 }
 0x226   : > { %944 = vmatmul.mubr.bf16.gmra.mrb[12].mxu0 %v757_v14  ;;  %2249 = vmatprep.subr.bf16.mxu1 %v2528_v50 }
 0x227   : > { %1137 = vmatmul.mubr.bf16.gmra.mrb[12].mxu1 %v757_v14  ;;  %1305 = vmatprep.mubr.bf16.mxu0 %v3707_v1 }
 0x228   : > { %2216 = vmatpush3.bf16.msra.mxu0 %v2529_v18  ;;  %1321 = vmatprep.mubr.bf16.mxu1 %v756_v7 }
 0x229   : > { %2257 = vmatpush3.bf16.msra.mxu1 %v2529_v18  ;;  %2217 = vmatprep.subr.bf16.mxu0 %v2530_v51 }
 0x22a   : > { %2250 = vmatprep.subr.bf16.mxu1 %v2530_v51 }
 0x22c   : > { %2218 = vmatpush3.bf16.msra.mxu0 %v2531_v52 }
 0x22d   : > { %2258 = vmatpush3.bf16.msra.mxu1 %v2531_v52 }
 0x22f   : > { %1306 = vmatmul.mubr.bf16.vlgmr.msra.gmra.mrb[16].mxu0 %v3709_v38 }
 0x230   : > { %1322 = vmatmul.mubr.bf16.vlgmr.msra.gmra.mrb[16].mxu1 %v755_v44  ;;  %1313 = vmatprep.mubr.bf16.mxu0 %v3713_v39 }
 0x231   : > { %1329 = vmatprep.mubr.bf16.mxu1 %v758_v46 }
 0x237   : > { %1314 = vmatmul.mubr.bf16.gmra.mrb[20].mxu0 %v753_v42 }
 0x238   : > { %1330 = vmatmul.mubr.bf16.gmra.mrb[20].mxu1 %v757_v14 }
 0x2e1   : > { %v2139_v19 = vpop.f32.mrb[0].mxu0 }
 0x2e2   : > { %v2179_v20 = vpop.f32.mrb[0].mxu1  ;;  %v2140_v53 = vpop.f32.mrb[1].mxu0 }
 0x2e3   : > { %v3738_v54 = vadd.f32 %v2140_v53, %v2139_v19  ;;  %v2180_v55 = vpop.f32.mrb[1].mxu1  ;;  %v2142_v56 = vpop.f32.mrb[2].mxu0 }
 0x2e4   : > { %v3740_v57 = vadd.f32 %v2180_v55, %v2179_v20  ;;  %v2182_v58 = vpop.f32.mrb[2].mxu1  ;;  %v2143_v28 = vpop.f32.mrb[3].mxu0 }
 0x2e5   : > { %v3742_v29 = vadd.f32 %v2143_v28, %v2142_v56  ;;  %v2183_v30 = vpop.f32.mrb[3].mxu1 }
 0x2e6   : > { %v3744_v31 = vadd.f32 %v2183_v30, %v2182_v58  ;;  %1402 = vrot.lane.b32.xlu0 %v3740_v57, %s4074_s13 }
 0x2e7   : > { %1364 = vrot.lane.b32.xlu1 %v3742_v29, %s4074_s13 }
 0x2e9   : > { %v2145_v59 = vpop.f32.mrb[4].mxu0 }
 0x2ea   : > { %v2185_v60 = vpop.f32.mrb[4].mxu1  ;;  %1362 = vrot.lane.b32.xlu0 %v3738_v54, %s4074_s13  ;;  %v2146_v61 = vpop.f32.mrb[5].mxu0 }
 0x2eb   : > { %v2186_v62 = vpop.f32.mrb[5].mxu1  ;;  %v3752_v63 = vadd.f32 %v2146_v61, %v2145_v59  ;;  %v2148_v3 = vpop.f32.mrb[6].mxu0 }
 0x2ec   : > { %v3754_v4 = vadd.f32 %v2186_v62, %v2185_v60  ;;  %v2188_v6 = vpop.f32.mrb[6].mxu1  ;;  %v2149_v9 = vpop.f32.mrb[7].mxu0 }
 0x2ed   : > { %v2189_v10 = vpop.f32.mrb[7].mxu1  ;;  %v3756_v11 = vadd.f32 %v2149_v9, %v2148_v3 }
 0x2ee   : > { %v3758_v15 = vadd.f32 %v2189_v10, %v2188_v6  ;;  %1406 = vrot.lane.b32.xlu1 %v3754_v4, %s4074_s13  ;;  %1404 = vrot.lane.b32.xlu0 %v3744_v31, %s4074_s13  ;;  %v1347_v6 = vld [vmem:[%s3560_s6 + $0x8] sm:$0xff]  ;;  %v1338_v10 = vld [vmem:[%s3554_s5] sm:$0xff] }
 0x2f1   : > { %v2151_v16 = vpop.f32.mrb[8].mxu0 }
 0x2f2   : > { %v2191_v17 = vpop.f32.mrb[8].mxu1  ;;  %1408 = vrot.lane.b32.xlu1 %v3758_v15, %s4074_s13  ;;  %1366 = vrot.lane.b32.xlu0 %v3752_v63, %s4074_s13  ;;  %v2152_v21 = vpop.f32.mrb[9].mxu0 }
 0x2f3   : > { %v2192_v22 = vpop.f32.mrb[9].mxu1  ;;  %v3768_v23 = vadd.f32 %v2152_v21, %v2151_v16  ;;  %v2154_v24 = vpop.f32.mrb[10].mxu0  ;;  %v1339_v16 = vld [vmem:[%s3554_s5 + $0x8] sm:$0xff]  ;;  %v1346_v21 = vld [vmem:[%s3560_s6] sm:$0xff] }
 0x2f4   : > { %v3770_v25 = vadd.f32 %v2192_v22, %v2191_v17  ;;  %v2194_v26 = vpop.f32.mrb[10].mxu1  ;;  %v2155_v27 = vpop.f32.mrb[11].mxu0 }
 0x2f5   : > { %v2195_v32 = vpop.f32.mrb[11].mxu1  ;;  %v3772_v33 = vadd.f32 %v2155_v27, %v2154_v24  ;;  %v1354_v24 = vmul.f32 %v3738_v54, %v1338_v10  ;;  %v1349_v54 = vld [vmem:[%s3560_s6 + $0x18] sm:$0xff] }
 0x2f6   : > { %v3774_v34 = vadd.f32 %v2195_v32, %v2194_v26  ;;  %1368 = vrot.lane.b32.xlu1 %v3756_v11, %s4074_s13  ;;  %1410 = vrot.lane.b32.xlu0 %v3770_v25, %s4074_s13  ;;  %v1355_v26 = vmul.f32 %v3742_v29, %v1339_v16 }
 0x2f9   : > { %v2157_v35 = vpop.f32.mrb[12].mxu0 }
 0x2fa   : > { %v2197_v36 = vpop.f32.mrb[12].mxu1  ;;  %1412 = vrot.lane.b32.xlu1 %v3774_v34, %s4074_s13  ;;  %1370 = vrot.lane.b32.xlu0 %v3768_v23, %s4074_s13  ;;  %v2158_v0 = vpop.f32.mrb[13].mxu0 }
 0x2fb   : > { %v2198_v37 = vpop.f32.mrb[13].mxu1  ;;  %v3784_v1 = vadd.f32 %v2158_v0, %v2157_v35  ;;  %v2160_v38 = vpop.f32.mrb[14].mxu0  ;;  %v1348_v0 = vld [vmem:[%s3560_s6 + $0x10] sm:$0xff] }
 0x2fc   : > { %v3786_v39 = vadd.f32 %v2198_v37, %v2197_v36  ;;  %v2200_v40 = vpop.f32.mrb[14].mxu1  ;;  %v2161_v2 = vpop.f32.mrb[15].mxu0 }
 0x2fd   : > { %v2201_v41 = vpop.f32.mrb[15].mxu1  ;;  %v3788_v5 = vadd.f32 %v2161_v2, %v2160_v38  ;;  %v1395_v2 = vmul.f32 %v3744_v31, %v1339_v16 }
 0x2fe   : > { %v3790_v42 = vadd.f32 %v2201_v41, %v2200_v40  ;;  %1372 = vrot.lane.b32.xlu1 %v3772_v33, %s4074_s13  ;;  %1414 = vrot.lane.b32.xlu0 %v3786_v39, %s4074_s13  ;;  %v1394_v40 = vmul.f32 %v3740_v57, %v1338_v10  ;;  %v1352_v10 = vld [vmem:[%s3560_s6 + $0x30] sm:$0xff] }
 0x302   : > { %1416 = vrot.lane.b32.xlu1 %v3790_v42, %s4074_s13  ;;  %1374 = vrot.lane.b32.xlu0 %v3784_v1, %s4074_s13  ;;  %v2219_v7 = vpop.f32.mrb[16].mxu0 }
 0x303   : > { %v2231_v8 = vpop.f32.mrb[16].mxu1  ;;  %v2220_v43 = vpop.f32.mrb[17].mxu0 }
 0x304   : > { %v2221_v12 = vadd.f32 %v2220_v43, %v2219_v7  ;;  %v2232_v13 = vpop.f32.mrb[17].mxu1  ;;  %v2222_v44 = vpop.f32.mrb[18].mxu0  ;;  %v1341_v43 = vld [vmem:[%s3554_s5 + $0x18] sm:$0xff] }
 0x305   : > { %v2233_v45 = vadd.f32 %v2232_v13, %v2231_v8  ;;  %v2234_v46 = vpop.f32.mrb[18].mxu1  ;;  %v2223_v47 = vpop.f32.mrb[19].mxu0  ;;  %v1340_v8 = vld [vmem:[%s3554_s5 + $0x10] sm:$0xff]  ;;  %v1397_v57 = vmul.f32 %v3758_v15, %v1341_v43  ;;  %v1342_v15 = vld [vmem:[%s3554_s5 + $0x20] sm:$0xff] }
 0x306   : > { %1376 = vrot.lane.b32.xlu1 %v3788_v5, %s4074_s13  ;;  %v2224_v48 = vadd.f32 %v2223_v47, %v2222_v44  ;;  %v2235_v49 = vpop.f32.mrb[19].mxu1 }
 0x307   : > { %v2236_v50 = vadd.f32 %v2235_v49, %v2234_v46  ;;  %v1396_v46 = vmul.f32 %v3754_v4, %v1340_v8  ;;  %v1357_v4 = vmul.f32 %v3756_v11, %v1341_v43 }
 0x308   : > { %v2097_v14 = vpack.c.bf16 %v2224_v48, %v2221_v12 }
 0x309   : > { %v2107_v18 = vpack.c.bf16 %v2236_v50, %v2233_v45 }
 0x30a   : > { %2098 = vst [vmem:[%s3573_s12] sm:$0xff] %v2097_v14   ;;  %v2225_v51 = vpop.f32.mrb[20].mxu0 }
 0x30b   : > { %2121 = vst [vmem:[%s3573_s12 + $0x10] sm:$0xff] %v2107_v18   ;;  %v2237_v52 = vpop.f32.mrb[20].mxu1  ;;  %v2226_v19 = vpop.f32.mrb[21].mxu0  ;;  %v1350_v18 = vld [vmem:[%s3560_s6 + $0x20] sm:$0xff] }
 0x30c   : > { %v2227_v20 = vadd.f32 %v2226_v19, %v2225_v51  ;;  %v2238_v53 = vpop.f32.mrb[21].mxu1  ;;  %v2228_v55 = vpop.f32.mrb[22].mxu0 }
 0x30d   : > { %v2239_v56 = vadd.f32 %v2238_v53, %v2237_v52  ;;  %v2240_v58 = vpop.f32.mrb[22].mxu1  ;;  %v2229_v28 = vpop.f32.mrb[23].mxu0  ;;  %v1356_v52 = vmul.f32 %v3752_v63, %v1340_v8  ;;  %v1343_v53 = vld [vmem:[%s3554_s5 + $0x28] sm:$0xff]  ;;  %v1398_v63 = vmul.f32 %v3770_v25, %v1342_v15 }
 0x30e   : > { %v2230_v30 = vadd.f32 %v2229_v28, %v2228_v55  ;;  %v2241_v59 = vpop.f32.mrb[23].mxu1  ;;  %v1351_v55 = vld [vmem:[%s3560_s6 + $0x28] sm:$0xff]  ;;  %v1399_v11 = vmul.f32 %v3774_v34, %v1343_v53  ;;  %v1359_v25 = vmul.f32 %v3772_v33, %v1343_v53 }
 0x30f   : > { %v2242_v60 = vadd.f32 %v2241_v59, %v2240_v58 }
 0x310   : > { %v2102_v61 = vpack.c.bf16 %v2230_v30, %v2227_v20 }
 0x311   : > { %v2112_v62 = vpack.c.bf16 %v2242_v60, %v2239_v56 }
 0x312   : > { %2120 = vst [vmem:[%s3573_s12 + $0x8] sm:$0xff] %v2102_v61  }
 0x313   : > { %2122 = vst [vmem:[%s3573_s12 + $0x18] sm:$0xff] %v2112_v62  }
 0x358   : > { %v1403_v3 = vpop.permute.xlu0 %1402 }
 0x359   : > { %v1365_v9 = vpop.permute.xlu1 %1364  ;;  %v1418_v32 = vmul.f32 %v1403_v3, %v1346_v21 }
 0x35a   : > { %v1379_v17 = vmul.f32 %v1365_v9, %v1347_v6 }
 0x35b   : > { %v1426_v29 = vadd.f32 %v1418_v32, %v1394_v40 }
 0x35c   : > { %v1363_v22 = vpop.permute.xlu0 %1362  ;;  %v1387_v35 = vadd.f32 %v1379_v17, %v1355_v26  ;;  %v1358_v17 = vmul.f32 %v3768_v23, %v1342_v15  ;;  %v1353_v26 = vld [vmem:[%s3560_s6 + $0x38] sm:$0xff] }
 0x35d   : > { %v1378_v27 = vmul.f32 %v1363_v22, %v1346_v21  ;;  %v1344_v22 = vld [vmem:[%s3554_s5 + $0x30] sm:$0xff] }
 0x35e   : > { %v1400_v23 = vmul.f32 %v3786_v39, %v1344_v22  ;;  %v1360_v39 = vmul.f32 %v3784_v1, %v1344_v22 }
 0x35f   : > { %v1386_v36 = vadd.f32 %v1378_v27, %v1354_v24  ;;  %v1345_v24 = vld [vmem:[%s3554_s5 + $0x38] sm:$0xff]  ;;  %s1622_s5 = sshll.u32 %s3573_s12, 4  ;;  %s4176_s12 = sld [smem:[#allocation57_spill]]  ;;  %s3862_s5 = int_to_ptr.vmem [resolvable:$true] %s1622_s5 }
 0x360   : > { %v1407_v37 = vpop.permute.xlu1 %1406  ;;  %v1405_v38 = vpop.permute.xlu0 %1404  ;;  %v1401_v33 = vmul.f32 %v3790_v42, %v1345_v24  ;;  %v1361_v42 = vmul.f32 %v3788_v5, %v1345_v24 }
 0x361   : > { %v2057_v41 = vpack.c.bf16 %v1387_v35, %v1386_v36  ;;  %v1419_v7 = vmul.f32 %v1405_v38, %v1347_v6  ;;  %v1420_v12 = vmul.f32 %v1407_v37, %v1348_v0 }
 0x363   : > { %2058 = vst [vmem:[%s3569_s15] sm:$0xff] %v2057_v41   ;;  %v1427_v13 = vadd.f32 %v1419_v7, %v1395_v2  ;;  %v1428_v48 = vadd.f32 %v1420_v12, %v1396_v46 }
 0x364   : > { %v1409_v44 = vpop.permute.xlu1 %1408  ;;  %v1367_v45 = vpop.permute.xlu0 %1366 }
 0x365   : > { %v2077_v31 = vpack.c.bf16 %v1427_v13, %v1426_v29  ;;  %v1421_v47 = vmul.f32 %v1409_v44, %v1349_v54  ;;  %v1380_v50 = vmul.f32 %v1367_v45, %v1348_v0  ;;  %s4177_s13 = smov %s4176_s12  ;;  %s3860_s30 = scalar_lea.hbm %s4176_s12, %s2013_s14 }
 0x366   : > { %s2718_s12 = scalar_lea.vmem %s2717_s29, 1024 }
 0x367   : > { %2078 = vst [vmem:[%s3571_s18] sm:$0xff] %v2077_v31   ;;  %v1429_v49 = vadd.f32 %v1421_v47, %v1397_v57  ;;  %v1388_v56 = vadd.f32 %v1380_v50, %v1356_v52  ;;  %p2720_p0 = scmp.lt.s32.totalorder %s2718_s12, %s2712_s7 }
 0x368   : > { %v1369_v14 = vpop.permute.xlu1 %1368  ;;  %v1411_v51 = vpop.permute.xlu0 %1410 }
 0x369   : > { %v2082_v19 = vpack.c.bf16 %v1429_v49, %v1428_v48  ;;  %v1381_v20 = vmul.f32 %v1369_v14, %v1349_v54  ;;  %v1422_v28 = vmul.f32 %v1411_v51, %v1350_v18  ;;  %p2721_p9 = por %p2720_p0, %p2719_p3 }
 0x36b   : > { %2117 = vst [vmem:[%s3571_s18 + $0x8] sm:$0xff] %v2082_v19   ;;  %v1389_v58 = vadd.f32 %v1381_v20, %v1357_v4  ;;  %v1430_v62 = vadd.f32 %v1422_v28, %v1398_v63  ;;  %p2722_p1 = pnand %p2721_p9, %p2715_p12 }
 0x36c   : > { %v1413_v30 = vpop.permute.xlu1 %1412  ;;  %v1371_v59 = vpop.permute.xlu0 %1370 }
 0x36d   : > { %v2062_v60 = vpack.c.bf16 %v1389_v58, %v1388_v56  ;;  %v1423_v61 = vmul.f32 %v1413_v30, %v1351_v55  ;;  %v1382_v6 = vmul.f32 %v1371_v59, %v1350_v18 }
 0x36f   : > { %2114 = vst [vmem:[%s3569_s15 + $0x8] sm:$0xff] %v2062_v60   ;;  %v1431_v3 = vadd.f32 %v1423_v61, %v1399_v11  ;;  %v1390_v27 = vadd.f32 %v1382_v6, %v1358_v17 }
 0x370   : > { %v1373_v9 = vpop.permute.xlu1 %1372  ;;  %v1415_v16 = vpop.permute.xlu0 %1414 }
 0x371   : > { %v2087_v34 = vpack.c.bf16 %v1431_v3, %v1430_v62  ;;  %v1383_v21 = vmul.f32 %v1373_v9, %v1351_v55  ;;  %v1424_v35 = vmul.f32 %v1415_v16, %v1352_v10 }
 0x373   : > { %2118 = vst [vmem:[%s3571_s18 + $0x10] sm:$0xff] %v2087_v34   ;;  %v1391_v32 = vadd.f32 %v1383_v21, %v1359_v25  ;;  %v1432_v40 = vadd.f32 %v1424_v35, %v1400_v23 }
 0x374   : > { %v1417_v36 = vpop.permute.xlu1 %1416  ;;  %v1375_v0 = vpop.permute.xlu0 %1374 }
 0x375   : > { %v2067_v37 = vpack.c.bf16 %v1391_v32, %v1390_v27  ;;  %v1425_v38 = vmul.f32 %v1417_v36, %v1353_v26  ;;  %v1384_v41 = vmul.f32 %v1375_v0, %v1352_v10 }
 0x377   : > { %2115 = vst [vmem:[%s3569_s15 + $0x10] sm:$0xff] %v2067_v37   ;;  %v1433_v2 = vadd.f32 %v1425_v38, %v1401_v33  ;;  %v1392_v54 = vadd.f32 %v1384_v41, %v1360_v39 }
 0x378   : > { %v1377_v7 = vpop.permute.xlu1 %1376 }
 0x379   : > { %v2092_v8 = vpack.c.bf16 %v1433_v2, %v1432_v40  ;;  %v1385_v43 = vmul.f32 %v1377_v7, %v1353_v26 }
 0x37b   : > { %2119 = vst [vmem:[%s3571_s18 + $0x18] sm:$0xff] %v2092_v8   ;;  %v1393_v29 = vadd.f32 %v1385_v43, %v1361_v42 }
 0x37c   : > { %2725 = shalt.err (!%p2722_p1)
}
 0x37d   : > { %s2726_s18 = scalar_lea.hbm %s3850_s24, 512  ;;  %s2730_s0 = scalar_lea.hbm %s4174_s1, 4096 }
 0x37e   : > { %p2727_p7 = scmp.ne.s32.totalorder %s3850_s24, %s2726_s18  ;;  %p2731_p13 = scmp.lt.u32.totalorder %s3850_s24, %s4174_s1 }
 0x37f   : > { %p2732_p4 = scmp.lt.u32.totalorder %s2730_s0, %s2726_s18  ;;  %p2734_p11 = scmp.lt.u32.totalorder %s2726_s18, %s3850_s24 }
 0x380   : > { %p2728_p6 = pnand %p2727_p7, %p4180_p5 }
 0x381   : > { %p2733_p8 = por %p2732_p4, %p2731_p13 }
 0x382   : > { %p2729_p10 = pneg %p2728_p6 }
 0x383   : > { %p2735_p2 = por %p2734_p11, %p2733_p8 }
 0x385   : > { %p2736_p12 = pnand %p2735_p2, %p2729_p10 }
 0x387   : > { %2739 = shalt.err (!%p2736_p12)
}
 0x388   : > { %s2990_s7 = smov 4   ;;  %s4181_s29 = smov 64   ;;  %v2072_v1 = vpack.c.bf16 %v1393_v29, %v1392_v54 }
 0x389   : > { %2272 = dma.vmem_to_hbm [thread:$0]  (%p4180_p5), %s3855_s17, 512, %s3850_s24, %s1560_s3, %s4181_s29, %s4181_s29, %s2990_s7  }
 0x38a   : > { %s2740_s12 = scalar_lea.vmem %s3862_s5, 512  ;;  %s2991_s18 = smov [#allocation17]  }
 0x38b   : > { %p2741_p3 = scmp.ne.s32.totalorder %s3862_s5, %s2740_s12  ;;  %s2744_s14 = sshll.u32 %s2991_s18, 4  ;;  %s2745_s14 = int_to_ptr.vmem [resolvable:$false] %s2744_s14 }
 0x38c   : > { %s2746_s6 = scalar_lea.vmem %s2745_s14, 1024  ;;  %p2747_p1 = scmp.lt.s32.totalorder %s3862_s5, %s2745_s14 }
 0x38d   : > { %p2742_p0 = pnand %p2741_p3, %p4180_p5  ;;  %p2748_p7 = scmp.lt.s32.totalorder %s2746_s6, %s2740_s12 }
 0x38f   : > { %p2743_p9 = pneg %p2742_p0  ;;  %p2749_p6 = por %p2748_p7, %p2747_p1 }
 0x391   : > { %p2750_p10 = pnand %p2749_p6, %p2743_p9 }
 0x393   : > { %2753 = shalt.err (!%p2750_p10)
}
 0x394   : > { %s2754_s17 = scalar_lea.hbm %s3860_s30, 512  ;;  %s2758_s16 = scalar_lea.hbm %s4177_s13, 4096 }
 0x395   : > { %p2755_p13 = scmp.ne.s32.totalorder %s3860_s30, %s2754_s17  ;;  %p2759_p11 = scmp.lt.u32.totalorder %s3860_s30, %s4177_s13 }
 0x396   : > { %p2760_p2 = scmp.lt.u32.totalorder %s2758_s16, %s2754_s17  ;;  %p2762_p3 = scmp.lt.u32.totalorder %s2754_s17, %s3860_s30 }
 0x397   : > { %p2756_p4 = pnand %p2755_p13, %p4180_p5 }
 0x398   : > { %p2761_p12 = por %p2760_p2, %p2759_p11 }
 0x399   : > { %p2757_p8 = pneg %p2756_p4 }
 0x39a   : > { %p2763_p0 = por %p2762_p3, %p2761_p12 }
 0x39c   : > { %p2764_p9 = pnand %p2763_p0, %p2757_p8 }
 0x39e   : > { %2767 = shalt.err (!%p2764_p9)
}
 0x39f   : > { %s4182_s12 = sld [smem:[#allocation26_spill]]  ;;  %2116 = vst [vmem:[%s3569_s15 + $0x18] sm:$0xff] %v2072_v1   ;;  %s2768_s17 = scalar_lea.vmem %s3870_s21, 512 }
 0x3a0   : > { %2273 = dma.vmem_to_hbm [thread:$0]  (%p4180_p5), %s3862_s5, 512, %s3860_s30, %s1560_s3, %s4181_s29, %s4181_s29, %s2990_s7  }
 0x3a1   : > { %p2769_p1 = scmp.ne.s32.totalorder %s3870_s21, %s2768_s17  ;;  %s2992_s24 = smov [#allocation14]  }
 0x3a2   : > { %s2772_s23 = sshll.u32 %s2992_s24, 4  ;;  %s2773_s23 = int_to_ptr.vmem [resolvable:$false] %s2772_s23 }
 0x3a3   : > { %p2770_p7 = pnand %p2769_p1, %p4180_p5  ;;  %s2774_s0 = scalar_lea.vmem %s2773_s23, 1024 }
 0x3a4   : > { %p2775_p10 = scmp.lt.s32.totalorder %s3870_s21, %s2773_s23  ;;  %p2776_p13 = scmp.lt.s32.totalorder %s2774_s0, %s2768_s17 }
 0x3a5   : > { %s4183_s14 = sand.u32 1, %s4182_s12   ;;  %p2771_p6 = pneg %p2770_p7 }
 0x3a6   : > { %s3928_s6 = scalar_lea.sflag [#allocation5], %s4183_s14  ;;  %p2777_p4 = por %p2776_p13, %p2775_p10 }
 0x3a8   : > { %p2778_p8 = pnand %p2777_p4, %p2771_p6 }
 0x3aa   : > { %2781 = shalt.err (!%p2778_p8)
}
 0x3ab   : > { %s2782_s3 = scalar_lea.hbm %s3868_s2, 512  ;;  %s2786_s30 = scalar_lea.hbm %s4179_s10, 4096 }
 0x3ac   : > { %p2783_p11 = scmp.ne.s32.totalorder %s3868_s2, %s2782_s3  ;;  %p2787_p3 = scmp.lt.u32.totalorder %s3868_s2, %s4179_s10 }
 0x3ad   : > { %p2788_p0 = scmp.lt.u32.totalorder %s2786_s30, %s2782_s3  ;;  %p2790_p1 = scmp.lt.u32.totalorder %s2782_s3, %s3868_s2 }
 0x3ae   : > { %p2784_p2 = pnand %p2783_p11, %p4180_p5 }
 0x3af   : > { %p2789_p9 = por %p2788_p0, %p2787_p3 }
 0x3b0   : > { %p2785_p12 = pneg %p2784_p2 }
 0x3b1   : > { %p2791_p7 = por %p2790_p1, %p2789_p9 }
 0x3b3   : > { %p2792_p6 = pnand %p2791_p7, %p2785_p12 }
 0x3b5   : > { %2795 = shalt.err (!%p2792_p6)
}
 0x3b6   : > { %2271 = dma.vmem_to_hbm [thread:$0]  (%p4180_p5), %s3870_s21, 512, %s3868_s2, %s3928_s6, %s4181_s29, %s4181_s29, %s2990_s7  }
 0x3b7 PF: > { %s4184_s18 = sld [smem:[#allocation25_spill]]  ;;  %p2307_p10 = scmp.ge.s32.totalorder %s2974_s27, 2 }
 0x3b8   : > { %p4185_p13 = scmp.ne.s32.totalorder %s4136_s19, 0 }
 0x3ba   : > { %p2297_p4 = pnand %p2307_p10, %p4185_p13 }
 0x3bd   : > { %s1637_s12 = sand.u32 1, %s4184_s18  }
 0x3be   : > { %s1638_s14 = scalar_lea.sflag [#allocation5], %s1637_s12 }
 0x3bf   : > { %2893 = dma.done.wait (!%p2297_p4), %s1638_s14, 512  }
 0x3c0   : > { %2895 = vsyncadd (!%p2297_p4), %s1638_s14, 4294966784  ;;  %s4186_s8 = sadd.s32 4294967294, %s2974_s27  }
 0x3c1   : > { %s1646_s17 = sand.u32 1, %s4186_s8  }
 0x3c2   : > { %s1647_s24 = scalar_lea.sflag [#allocation16], %s1646_s17 }
 0x3c3   : > { %2897 = dma.done.wait (!%p2297_p4), %s1647_s24, 1024  }
 0x3c4   : > { %2899 = vsyncadd (!%p2297_p4), %s1647_s24, 4294966272  ;;  %s38_s27 = sadd.s32 1, %s2974_s27   ;;  %s4188_s30 = sld [smem:[#allocation26_spill]] }
 0x3c5   : > { %p3962_p5 = scmp.ge.s32.totalorder %s38_s27, 10   ;;  %s4189_s12 = sld [smem:[#allocation28_spill]] }
 0x3c6   : > { %s4190_s19 = sld [smem:[#allocation29_spill]]  ;;  %s4191_s15 = sld [smem:[#allocation30_spill]] }
 0x3c7   : > { %s4192_s16 = sld [smem:[#allocation31_spill]]  ;;  %s4193_s17 = sld [smem:[#allocation40_spill]] }
 0x3c8   : > { %s4194_s18 = sld [smem:[#allocation32_spill]]  ;;  %s4195_s21 = sld [smem:[#allocation36_spill]] }
 0x3c9   : > { %s4196_s24 = sld [smem:[#allocation38_spill]]  ;;  %s4197_s7 = sld [smem:[#allocation44_spill]] }
 0x3ca   : > { %4198 = sst [smem:[#allocation25_spill]] %s2910_s11  ;;  %s4199_s29 = sld [smem:[#allocation46_spill]] }
 0x3cb   : > { %s4200_s11 = smov %s3332_s28  ;;  %s4202_s14 = smov %s3418_s4 }
 0x3cc   : > { %4201 = sst [smem:[#allocation26_spill]] %s4190_s19  ;;  %s4203_s19 = smov %s2946_s20 }
 0x3cd   : > { %s4204_s20 = smov %s3329_s22  ;;  %s4205_s22 = smov %s2966_s25 }
 0x3ce   : > { %s4206_s23 = smov %s2970_s26  ;;  %37 = sbr.rel (!%p3962_p5) target bundleno = 33 (0x21), region = 190 }
 0x3cf   : > { %s4207_s25 = smov %s4197_s7 }
 0x3d0   : > { %s4208_s26 = smov %s4199_s29 }
 0x3d5   :  { %1661 = vsyncpa [#allocation4], 1 }
 0x3d6   :  { %1663 = vsyncpa [#allocation4 + $0x1], 1 }
 0x3d7   :  { %1664 = vsyncpa [#allocation7], 1 }
 0x3d8   :  { %1666 = vsyncpa [#allocation7 + $0x1], 1 }
 0x3d9   :  { %1667 = vsyncpa [#allocation10], 1 }
 0x3da   :  { %1669 = vsyncpa [#allocation10 + $0x1], 1 }
 0x3db   :  { %1670 = vsyncpa [#allocation13], 1 }
 0x3dc   :  { %1672 = vsyncpa [#allocation13 + $0x1], 1 }
 0x3dd   :  { %1673 = vsyncpa [#allocation5], 1 }
 0x3de   :  { %1675 = vsyncpa [#allocation5 + $0x1], 1 }
 0x3df   :  { %1676 = vsyncpa [#allocation16], 1 }
 0x3e0   :  { %1678 = vsyncpa [#allocation16 + $0x1], 1 }

</bundles_post_ra>
